<compile_context>
chip_gen: v7x
topology: tpu7x:2x2x1
jax: 0.10.0
libtpu: 0.0.40
codegen_flags: <defaults>
</compile_context>

<pallas_src>
import jax
import jax.numpy as jnp
from jax.experimental import pallas as pl
from jax.experimental.pallas import tpu as pltpu


_LANE = 128
_MIN_PALLAS_BYTES = 64 * 1024          # below this, native concat wins (launch overhead)
_VMEM_TILE_BUDGET = 20 * 1024 * 1024   # target double-buffered tile footprint
_VMEM_LIMIT_BYTES = 32 * 1024 * 1024   # explicit scoped-VMEM limit (safe on all gens)
_MAX_TB = 1024                         # measured v6e sweet spot for tiled copies


def _sublane(dtype):
    # Sublane packing granularity: 8 rows for 32-bit, 16 for bf16, 32 for int8.
    itemsize = jnp.dtype(dtype).itemsize
    return 8 * max(1, 4 // itemsize)


def _make_concat_kernel(offsets, sizes):
    """Kernel that writes each input tile into its static output column slab."""

    def kernel(*refs):
        out_ref = refs[-1]
        in_refs = refs[:-1]
        for in_ref, off, sz in zip(in_refs, offsets, sizes):
            # Static python-int column slab; off/sz are multiples of 128 on this
            # path, so these lower to lane-dense unmasked stores.
            out_ref[:, off:off + sz] = in_ref[...]

    return kernel


def concat_layer(xs, dim=1):
    """Pallas implementation of ConcatLayer.forward for a list of 2-D arrays.

    xs: sequence of (B, D_i) arrays, same dtype and batch size.
    Returns (B, sum(D_i)) array, equivalent to jnp.concatenate(xs, axis=dim).
    """
    xs = list(xs)
    assert len(xs) >= 1, "ConcatLayer needs at least one input"
    if len(xs) == 1:
        return xs[0]
    assert dim == 1, "ConcatLayer kernel implemented for dim=1 on 2-D inputs"

    B = xs[0].shape[0]
    dtype = xs[0].dtype
    for x in xs:
        assert x.ndim == 2, "ConcatLayer kernel expects 2-D (batch, features) inputs"
        assert x.shape[0] == B, "all inputs must share the batch dimension"
        assert x.dtype == dtype, "all inputs must share the same dtype"

    sizes = [int(x.shape[1]) for x in xs]
    offsets = []
    acc = 0
    for s in sizes:
        offsets.append(acc)
        acc += s
    D_out = acc

    itemsize = jnp.dtype(dtype).itemsize
    total_bytes = B * D_out * itemsize
    sub = _sublane(dtype)

    lane_aligned = all(s % _LANE == 0 for s in sizes)
    batch_ok = (B % sub == 0)
    # Double-buffered tile footprint at the smallest legal tile (TB == sub):
    min_footprint = 4 * sub * D_out * itemsize

    if (total_bytes < _MIN_PALLAS_BYTES
            or not lane_aligned
            or not batch_ok
            or min_footprint > _VMEM_TILE_BUDGET):
        # Tiny concat, ragged feature dims, or a single row that would blow the
        # VMEM budget -> XLA's native fused concat.
        return jnp.concatenate(xs, axis=dim)

    # Batch tile size: footprint = 2 * (TB*D_out [out] + sum TB*D_i [ins]) * itemsize
    #                            = 4 * TB * D_out * itemsize  <= budget.
    tb_max = _VMEM_TILE_BUDGET // (4 * D_out * itemsize)
    TB = max(sub, (tb_max // sub) * sub)
    TB = min(TB, _MAX_TB, B)
    # Keep blocks exactly dividing B so every write is a full, unmasked tile.
    while TB > sub and B % TB != 0:
        TB -= sub
    if B % TB != 0:
        TB = sub  # B is a multiple of sub (checked above)

    grid = (B // TB,)
    kernel = _make_concat_kernel(offsets, sizes)

    in_specs = [pl.BlockSpec((TB, s), lambda i: (i, 0)) for s in sizes]
    out_spec = pl.BlockSpec((TB, D_out), lambda i: (i, 0))

    return pl.pallas_call(
        kernel,
        out_shape=jax.ShapeDtypeStruct((B, D_out), dtype),
        grid_spec=pltpu.PrefetchScalarGridSpec(
            num_scalar_prefetch=0,
            grid=grid,
            in_specs=in_specs,
            out_specs=out_spec,
        ),
        compiler_params=pltpu.CompilerParams(
            dimension_semantics=("parallel",),
            vmem_limit_bytes=_VMEM_LIMIT_BYTES,
        ),
    )(*xs)


if __name__ == "__main__":
    key = jax.random.PRNGKey(0)
    k1, k2, k3, k4, k5 = jax.random.split(key, 5)

    # Main path: batch large enough to exercise the tiled, pipelined Pallas
    # kernel (grid > 1), feature dims 128-lane aligned.
    B = 2048
    x1 = jax.random.normal(k1, (B, 128), dtype=jnp.float32)
    x2 = jax.random.normal(k2, (B, 256), dtype=jnp.float32)
    x3 = jax.random.normal(k3, (B, 128), dtype=jnp.float32)

    out = concat_layer([x1, x2, x3], dim=1)
    out = jax.block_until_ready(out)

    ref = jnp.concatenate([x1, x2, x3], axis=1)
    assert out.shape == ref.shape, (out.shape, ref.shape)
    assert jnp.array_equal(out, ref), "Pallas concat mismatch vs jnp.concatenate"

    # Fallback path: tiny / ragged feature dims take the jnp.concatenate route.
    y1 = jax.random.normal(k4, (8, 100), dtype=jnp.float32)
    y2 = jax.random.normal(k5, (8, 36), dtype=jnp.float32)
    out_small = jax.block_until_ready(concat_layer([y1, y2], dim=1))
    ref_small = jnp.concatenate([y1, y2], axis=1)
    assert jnp.array_equal(out_small, ref_small), "fallback concat mismatch"

    print("KERNEL_OK")
</pallas_src>

<mosaic_0001>
module attributes {stable_mosaic.version = 11 : i64} {
  func.func @kernel(%arg0: i32, %arg1: memref<1024x128xf32, #tpu.memory_space<vmem>>, %arg2: memref<1024x256xf32, #tpu.memory_space<vmem>>, %arg3: memref<1024x128xf32, #tpu.memory_space<vmem>>, %arg4: memref<1024x512xf32, #tpu.memory_space<vmem>>) attributes {dimension_semantics = [#tpu.dimension_semantics<parallel>], iteration_bounds = array<i64: 2>, scalar_prefetch = 0 : i64, scratch_operands = 0 : i64, tpu.core_type = #tpu.core_type<tc>, window_params = [{transform_indices = @transform_0, window_bounds = array<i64: 1024, 128>}, {transform_indices = @transform_1, window_bounds = array<i64: 1024, 256>}, {transform_indices = @transform_2, window_bounds = array<i64: 1024, 128>}, {transform_indices = @transform_3, window_bounds = array<i64: 1024, 512>}]} {
    %c0 = arith.constant 0 : index
    %c0_0 = arith.constant 0 : index
    %0 = vector.load %arg1[%c0, %c0_0] : memref<1024x128xf32, #tpu.memory_space<vmem>>, vector<1024x128xf32>
    %c0_1 = arith.constant 0 : index
    %c0_2 = arith.constant 0 : index
    %1 = vector.load %arg4[%c0_1, %c0_2] : memref<1024x512xf32, #tpu.memory_space<vmem>>, vector<1024x128xf32>
    tpu.vector_store %arg4[%c0_1, %c0_2], %0 {strides = array<i32>} : memref<1024x512xf32, #tpu.memory_space<vmem>>, vector<1024x128xf32>,
    %c0_3 = arith.constant 0 : index
    %c0_4 = arith.constant 0 : index
    %2 = vector.load %arg2[%c0_3, %c0_4] : memref<1024x256xf32, #tpu.memory_space<vmem>>, vector<1024x256xf32>
    %c0_5 = arith.constant 0 : index
    %c128 = arith.constant 128 : index
    %3 = vector.load %arg4[%c0_5, %c128] : memref<1024x512xf32, #tpu.memory_space<vmem>>, vector<1024x256xf32>
    tpu.vector_store %arg4[%c0_5, %c128], %2 {strides = array<i32>} : memref<1024x512xf32, #tpu.memory_space<vmem>>, vector<1024x256xf32>,
    %c0_6 = arith.constant 0 : index
    %c0_7 = arith.constant 0 : index
    %4 = vector.load %arg3[%c0_6, %c0_7] : memref<1024x128xf32, #tpu.memory_space<vmem>>, vector<1024x128xf32>
    %c0_8 = arith.constant 0 : index
    %c384 = arith.constant 384 : index
    %5 = vector.load %arg4[%c0_8, %c384] : memref<1024x512xf32, #tpu.memory_space<vmem>>, vector<1024x128xf32>
    tpu.vector_store %arg4[%c0_8, %c384], %4 {strides = array<i32>} : memref<1024x512xf32, #tpu.memory_space<vmem>>, vector<1024x128xf32>,
    return
  }
  func.func @transform_0(%arg0: i32) -> (i32, i32) {
    %c0_i32 = arith.constant 0 : i32
    %c0_i32_0 = arith.constant 0 : i32
    return %arg0, %c0_i32 : i32, i32
  }
  func.func @transform_1(%arg0: i32) -> (i32, i32) {
    %c0_i32 = arith.constant 0 : i32
    %c0_i32_0 = arith.constant 0 : i32
    return %arg0, %c0_i32 : i32, i32
  }
  func.func @transform_2(%arg0: i32) -> (i32, i32) {
    %c0_i32 = arith.constant 0 : i32
    %c0_i32_0 = arith.constant 0 : i32
    return %arg0, %c0_i32 : i32, i32
  }
  func.func @transform_3(%arg0: i32) -> (i32, i32) {
    %c0_i32 = arith.constant 0 : i32
    %c0_i32_0 = arith.constant 0 : i32
    return %arg0, %c0_i32 : i32, i32
  }
}

</mosaic_0001>

<bundles_post_ra>
// kernel: tpu_custom_call.1
= control target key start
LH: loop header
LB: loop body
LE: loop exit
PB: predicated region body
PF: predicated region fallthrough
CT: control target
= control target key end

     0   :  { %s3000_s0 = inlined_call_operand.hbm [shape: f32[2048,128], index: 0, kind: input, shape index: {}]   ;;  %s3001_s1 = inlined_call_operand.hbm [shape: f32[2048,256], index: 1, kind: input, shape index: {}]   ;;  %s3002_s2 = inlined_call_operand.hbm [shape: f32[2048,128], index: 2, kind: input, shape index: {}]   ;;  %s3003_s3 = inlined_call_operand.hbm [shape: f32[2048,512], index: 3, kind: output, shape index: {}]  }
   0x1   :  { %3006 = sst [smem:[#allocation12_spill]] %s3000_s0 }
   0x2   :  { %8 = vsyncpa [#allocation3], 0 }
   0x3   :  { %10 = vsyncpa [#allocation3 + $0x1], 0 }
   0x4   :  { %11 = vsyncpa [#allocation6], 0 }
   0x5   :  { %13 = vsyncpa [#allocation6 + $0x1], 0 }
   0x6   :  { %14 = vsyncpa [#allocation4], 0 }
   0x7   :  { %16 = vsyncpa [#allocation4 + $0x1], 0  ;;  %s1710_s12 = smov 0   ;;  %s1712_s13 = smov 0  }
   0x8   :  { %s1714_s14 = smov 0   ;;  %s1716_s15 = smov 0  }
   0x9 LB: > { %s1731_s16 = sadd.s32 4294967295, %s1678_s15   ;;  %s1426_s17 = sadd.s32 4294967294, %s1678_s15   ;;  %s1678_s15 = sphi %s1716_s15, %s3023_s15   ;;  %s1674_s14 = sphi %s1714_s14, %s3022_s14   ;;  %s1670_s13 = sphi %s1712_s13, %s3021_s13   ;;  %s1666_s12 = sphi %s1710_s12, %s3020_s12  }
   0xa   : > { %s1735_s18 = sadd.s32 1, %s1678_s15   ;;  %s29_s19 = sadd.s32 1, %s1674_s14 }
   0xb   : > { %s26_s20 = ssub.s32 %s1678_s15, %s1735_s18  ;;  %p36_p0 = scmp.ne.s32.totalorder %s1674_s14, %s1670_s13 }
   0xc   : > { %p27_p1 = scmp.eq.s32.totalorder %s26_s20, 0  ;;  %p37_p2 = scmp.eq.s32.totalorder %s1678_s15, 0 }
   0xd   : > { %p42_p3 = scmp.ne.s32.totalorder %s1670_s13, %s1666_s12  ;;  %p43_p4 = scmp.eq.s32.totalorder %s1731_s16, 0 }
   0xe   : > { %s1747_s21 = scalar_select %p27_p1, %s1674_s14, %s29_s19  }
   0xf   : > { %p38_p5 = por %p37_p2, %p36_p0  ;;  %p1749_p6 = por %p43_p4, %p42_p3 }
  0x10   : > { %p118_p7 = scmp.eq.s32.totalorder %s1731_s16, 1  ;;  %p124_p8 = scmp.eq.s32.totalorder %s1426_s17, 1 }
  0x11   : > { %s3007_s22 = scalar_select %p1749_p6, 1, 0 }
  0x12   : > { %p1478_p10 = scmp.lt.s32.totalorder %s1678_s15, 2  ;;  %p1756_p11 = por %p118_p7, %p36_p0 }
  0x13   : > { %p1760_p12 = por %p124_p8, %p42_p3  ;;  %s1765_s25 = sand.u32 1, %s1674_s14  }
  0x14   : > { %s3008_s23 = scalar_select %p1756_p11, 1, 0 }
  0x15   : > { %s3009_s24 = scalar_select %p1760_p12, 1, 0 }
  0x16   : > { %p1767_p13 = pnand %p1478_p10, %p38_p5  ;;  %s165_s27 = sand.u32 1, %s1678_s15  }
  0x17   : > { %s1432_s28 = sshll.u32 %s1765_s25, 11  ;;  %s1452_s29 = sshll.u32 %s1678_s15, 15 }
  0x18   : > { %s1777_s5 = scalar_lea.hbm %s3001_s1, %s1452_s29  ;;  %s169_s6 = scalar_lea.vmem [#allocation5], %s1432_s28 }
  0x19   : > { %s177_s7 = sshll.u32 %s169_s6, 4  ;;  %s1782_s8 = scalar_lea.sflag [#allocation6], %s165_s27  ;;  %s1779_s7 = int_to_ptr.vmem [resolvable:$true] %s177_s7 }
  0x1a   : > { %s1518_s9 = scalar_lea.hbm %s1777_s5, 32768  ;;  %p1788_p2 = pneg %p1767_p13 }
  0x1b   : > { %p1519_p1 = scmp.ne.s32.totalorder %s1777_s5, %s1518_s9  ;;  %s1523_s19 = scalar_lea.hbm %s3001_s1, 65536 }
  0x1c   : > { %p1524_p5 = scmp.lt.u32.totalorder %s1777_s5, %s3001_s1  ;;  %p1525_p7 = scmp.lt.u32.totalorder %s1523_s19, %s1518_s9 }
  0x1d   : > { %p1521_p3 = pnand %p1788_p2, %p1519_p1  ;;  %p1527_p10 = scmp.lt.u32.totalorder %s1518_s9, %s1777_s5 }
  0x1e   : > { %p1526_p8 = por %p1525_p7, %p1524_p5 }
  0x1f   : > { %p1522_p4 = pneg %p1521_p3 }
  0x20   : > { %p1528_p9 = por %p1527_p10, %p1526_p8 }
  0x22   : > { %p1529_p0 = pnand %p1528_p9, %p1522_p4 }
  0x24   : > { %1532 = shalt.err (!%p1529_p0)
}
  0x25   : > { %s1533_s27 = scalar_lea.vmem %s1779_s7, 32768  ;;  %s1680_s29 = smov [#allocation5]  }
  0x26   : > { %p1534_p1 = scmp.ne.s32.totalorder %s1779_s7, %s1533_s27  ;;  %s1538_s30 = sshll.u32 %s1680_s29, 4  ;;  %s1539_s30 = int_to_ptr.vmem [resolvable:$false] %s1538_s30 }
  0x27   : > { %s1540_s4 = scalar_lea.vmem %s1539_s30, 65536  ;;  %p1541_p11 = scmp.lt.s32.totalorder %s1779_s7, %s1539_s30 }
  0x28   : > { %p1536_p3 = pnand %p1534_p1, %p1788_p2  ;;  %p1542_p6 = scmp.lt.s32.totalorder %s1540_s4, %s1533_s27 }
  0x2a   : > { %p1537_p12 = pneg %p1536_p3  ;;  %p1543_p5 = por %p1542_p6, %p1541_p11 }
  0x2c   : > { %p1544_p7 = pnand %p1543_p5, %p1537_p12 }
  0x2e   : > { %1547 = shalt.err (!%p1544_p7)
}
  0x2f   : > { %s1681_s6 = smov 256   ;;  %s1682_s9 = smov 16  }
  0x30   : > { %1470 = dma.hbm_to_vmem [thread:$0]  (!%p1767_p13), %s1777_s5, 32768, %s1779_s7, %s1782_s8, %s1681_s6, %s1681_s6, %s1682_s9  }
  0x31   : > { %p206_p9 = scmp.lt.s32.totalorder %s1678_s15, 3  ;;  %s1429_s11 = sshll.u32 %s1765_s25, 10 }
  0x32   : > { %s1450_s17 = sshll.u32 %s1678_s15, 14  ;;  %p3012_p6 = scmp.ge.s32.totalorder %s1678_s15, 1 }
  0x33   : > { %s3014_s0 = sld [smem:[#allocation12_spill]]  ;;  %s148_s5 = scalar_lea.vmem [#allocation2], %s1429_s11 }
  0x34   : > { %p1817_p11 = pnand %p3012_p6, %p206_p9  ;;  %s155_s7 = sshll.u32 %s148_s5, 4  ;;  %s1830_s7 = int_to_ptr.vmem [resolvable:$true] %s155_s7 }
  0x35   : > { %s145_s29 = scalar_lea.sflag [#allocation3], %s1765_s25 }
  0x36   : > { %s3013_s19 = scalar_select %p1817_p11, 1, 0 }
  0x39   : > { %s1826_s27 = scalar_lea.hbm %s3014_s0, %s1450_s17  ;;  %s1553_s9 = scalar_lea.hbm %s3014_s0, 32768 }
  0x3a   : > { %s1548_s30 = scalar_lea.hbm %s1826_s27, 16384  ;;  %p1554_p8 = scmp.lt.u32.totalorder %s1826_s27, %s3014_s0 }
  0x3b   : > { %p1549_p12 = scmp.ne.s32.totalorder %s1826_s27, %s1548_s30  ;;  %p1555_p10 = scmp.lt.u32.totalorder %s1553_s9, %s1548_s30 }
  0x3c   : > { %p1557_p3 = scmp.lt.u32.totalorder %s1548_s30, %s1826_s27 }
  0x3d   : > { %p1551_p0 = pnand %p1549_p12, %p1788_p2  ;;  %p1556_p1 = por %p1555_p10, %p1554_p8 }
  0x3f   : > { %p1552_p4 = pneg %p1551_p0  ;;  %p1558_p5 = por %p1557_p3, %p1556_p1 }
  0x41   : > { %p1559_p7 = pnand %p1558_p5, %p1552_p4 }
  0x43   : > { %1562 = shalt.err (!%p1559_p7)
}
  0x44   : > { %s1563_s5 = scalar_lea.vmem %s1830_s7, 16384  ;;  %s1683_s4 = smov [#allocation2]  }
  0x45   : > { %p1564_p9 = scmp.ne.s32.totalorder %s1830_s7, %s1563_s5  ;;  %s1568_s6 = sshll.u32 %s1683_s4, 4  ;;  %s1569_s6 = int_to_ptr.vmem [resolvable:$false] %s1568_s6 }
  0x46   : > { %s1570_s20 = scalar_lea.vmem %s1569_s6, 32768  ;;  %p1571_p0 = scmp.lt.s32.totalorder %s1830_s7, %s1569_s6 }
  0x47   : > { %p1566_p6 = pnand %p1564_p9, %p1788_p2  ;;  %p1572_p11 = scmp.lt.s32.totalorder %s1570_s20, %s1563_s5 }
  0x49   : > { %p1567_p12 = pneg %p1566_p6  ;;  %p1573_p8 = por %p1572_p11, %p1571_p0 }
  0x4b   : > { %p1574_p10 = pnand %p1573_p8, %p1567_p12 }
  0x4d   : > { %1577 = shalt.err (!%p1574_p10)
}
  0x4e   : > { %s1684_s30 = smov 128   ;;  %s1685_s9 = smov 8  }
  0x4f   : > { %1467 = dma.hbm_to_vmem [thread:$0]  (!%p1767_p13), %s1826_s27, 16384, %s1830_s7, %s145_s29, %s1684_s30, %s1684_s30, %s1685_s9  }
  0x50   : > { %s1864_s4 = scalar_lea.hbm %s3002_s2, %s1450_s17  ;;  %s191_s6 = scalar_lea.vmem [#allocation7], %s1429_s11 }
  0x51   : > { %s198_s20 = sshll.u32 %s191_s6, 4  ;;  %s1578_s0 = scalar_lea.hbm %s1864_s4, 16384  ;;  %s1868_s20 = int_to_ptr.vmem [resolvable:$true] %s198_s20 }
  0x52   : > { %p1579_p11 = scmp.ne.s32.totalorder %s1864_s4, %s1578_s0  ;;  %s1583_s29 = scalar_lea.hbm %s3002_s2, 32768 }
  0x53   : > { %p1584_p3 = scmp.lt.u32.totalorder %s1864_s4, %s3002_s2  ;;  %p1585_p5 = scmp.lt.u32.totalorder %s1583_s29, %s1578_s0 }
  0x54   : > { %p1581_p4 = pnand %p1579_p11, %p1788_p2  ;;  %p1587_p9 = scmp.lt.u32.totalorder %s1578_s0, %s1864_s4 }
  0x55   : > { %p1586_p7 = por %p1585_p5, %p1584_p3 }
  0x56   : > { %p1582_p1 = pneg %p1581_p4 }
  0x57   : > { %p1588_p6 = por %p1587_p9, %p1586_p7 }
  0x59   : > { %p1589_p12 = pnand %p1588_p6, %p1582_p1 }
  0x5b   : > { %1592 = shalt.err (!%p1589_p12)
}
  0x5c   : > { %s1593_s25 = scalar_lea.vmem %s1868_s20, 16384  ;;  %s1686_s11 = smov [#allocation7]  }
  0x5d   : > { %p1594_p0 = scmp.ne.s32.totalorder %s1868_s20, %s1593_s25  ;;  %s1598_s5 = sshll.u32 %s1686_s11, 4  ;;  %s1599_s5 = int_to_ptr.vmem [resolvable:$false] %s1598_s5 }
  0x5e   : > { %s1600_s6 = scalar_lea.vmem %s1599_s5, 32768  ;;  %p1601_p11 = scmp.lt.s32.totalorder %s1868_s20, %s1599_s5 }
  0x5f   : > { %p1596_p8 = pnand %p1594_p0, %p1788_p2  ;;  %p1602_p4 = scmp.lt.s32.totalorder %s1600_s6, %s1593_s25 }
  0x61   : > { %p1597_p10 = pneg %p1596_p8  ;;  %p1603_p3 = por %p1602_p4, %p1601_p11 }
  0x63   : > { %p1604_p5 = pnand %p1603_p3, %p1597_p10 }
  0x65   : > { %1607 = shalt.err (!%p1604_p5)
}
  0x66   : > { %1473 = dma.hbm_to_vmem [thread:$0]  (!%p1767_p13), %s1864_s4, 16384, %s1868_s20, %s1782_s8, %s1684_s30, %s1684_s30, %s1685_s9  }
  0x67   : > { %p3015_p2 = scmp.ne.s32.totalorder %s3013_s19, 0 }
  0x68   : > { %s1898_s0 = sand.u32 (!%p3015_p2), 1, %s1670_s13   ;;  %p3016_p1 = scmp.ne.s32.totalorder (!%p3015_p2), %s3007_s22, 0 }
  0x69   : > { %210 = sbr.rel (%p3015_p2) target bundleno = 388 (0x184), region = 32  ;;  %s1440_s10 = sshll.u32 (!%p3015_p2), %s1898_s0, 10 }
  0x6a   : > { %s213_s27 = scalar_lea.sflag (!%p3015_p2), [#allocation3], %s1898_s0  ;;  %s1904_s26 = scalar_lea.vmem (!%p3015_p2), [#allocation2], %s1440_s10 }
  0x70   : > { %1653 = dma.done.wait (%p3016_p1), %s213_s27, 16384  }
  0x71   : > { %1655 = vsyncadd (%p3016_p1), %s213_s27, 4294950912  ;;  %s221_s8 = sand.u32 1, %s1731_s16   ;;  %s1441_s19 = sshll.u32 %s1898_s0, 11 }
  0x72   : > { %s222_s30 = scalar_lea.sflag [#allocation6], %s221_s8  ;;  %s1912_s9 = scalar_lea.vmem [#allocation5], %s1441_s19 }
  0x73   : > { %1657 = dma.done.wait (%p3016_p1), %s222_s30, 49152  }
  0x74   : > { %1659 = vsyncadd (%p3016_p1), %s222_s30, 4294918144  ;;  %s1443_s4 = sshll.u32 %s1898_s0, 12  ;;  %v271_v0 = vld [vmem:[%s1904_s26] sm:$0xff]  ;;  %v272_v1 = vld [vmem:[%s1904_s26 + $0x8] sm:$0xff]  ;;  %s2691_s22 = scalar_lea.vmem [#allocation7], %s1440_s10 }
  0x75   : > { %v273_v2 = vld [vmem:[%s1904_s26 + $0x10] sm:$0xff]  ;;  %s1922_s20 = scalar_lea.vmem [#allocation8], %s1443_s4  ;;  %v274_v3 = vld [vmem:[%s1904_s26 + $0x18] sm:$0xff]  ;;  %v275_v4 = vld [vmem:[%s1904_s26 + $0x20] sm:$0xff]  ;;  %s1455_s7 = sshll.u32 %s1731_s16, 16 }
  0x76   : > { %399 = vst [vmem:[%s1922_s20] sm:$0xff] %v271_v0  ;;  %400 = vst [vmem:[%s1922_s20 + $0x20] sm:$0xff] %v272_v1  ;;  %v276_v5 = vld [vmem:[%s1904_s26 + $0x28] sm:$0xff]  ;;  %v277_v6 = vld [vmem:[%s1904_s26 + $0x30] sm:$0xff]  ;;  %s1310_s29 = sshll.u32 %s1922_s20, 4  ;;  %s2941_s28 = scalar_lea.hbm %s3003_s3, %s1455_s7  ;;  %s2943_s29 = int_to_ptr.vmem [resolvable:$true] %s1310_s29 }
  0x77   : > { %401 = vst [vmem:[%s1922_s20 + $0x40] sm:$0xff] %v273_v2  ;;  %402 = vst [vmem:[%s1922_s20 + $0x60] sm:$0xff] %v274_v3  ;;  %v278_v7 = vld [vmem:[%s1904_s26 + $0x38] sm:$0xff]  ;;  %v279_v8 = vld [vmem:[%s1904_s26 + $0x40] sm:$0xff]  ;;  %s1296_s25 = scalar_lea.sflag [#allocation4], %s1898_s0  ;;  %s1608_s11 = scalar_lea.vmem %s2943_s29, 65536 }
  0x78   : > { %403 = vst [vmem:[%s1922_s20 + $0x80] sm:$0xff] %v275_v4  ;;  %404 = vst [vmem:[%s1922_s20 + $0xa0] sm:$0xff] %v276_v5  ;;  %v280_v9 = vld [vmem:[%s1904_s26 + $0x48] sm:$0xff]  ;;  %v281_v10 = vld [vmem:[%s1904_s26 + $0x50] sm:$0xff]  ;;  %p1609_p13 = scmp.ne.s32.totalorder %s2943_s29, %s1608_s11  ;;  %p3017_p7 = scmp.ne.s32.totalorder %s3008_s23, 0 }
  0x79   : > { %405 = vst [vmem:[%s1922_s20 + $0xc0] sm:$0xff] %v277_v6  ;;  %406 = vst [vmem:[%s1922_s20 + $0xe0] sm:$0xff] %v278_v7  ;;  %v282_v11 = vld [vmem:[%s1904_s26 + $0x58] sm:$0xff]  ;;  %v283_v12 = vld [vmem:[%s1904_s26 + $0x60] sm:$0xff]  ;;  %s1687_s5 = smov [#allocation8]  }
  0x7a   : > { %407 = vst [vmem:[%s1922_s20 + $0x100] sm:$0xff] %v279_v8  ;;  %408 = vst [vmem:[%s1922_s20 + $0x120] sm:$0xff] %v280_v9  ;;  %v284_v13 = vld [vmem:[%s1904_s26 + $0x68] sm:$0xff]  ;;  %v285_v14 = vld [vmem:[%s1904_s26 + $0x70] sm:$0xff]  ;;  %p1610_p9 = pnand %p1609_p13, %p3017_p7  ;;  %s1612_s6 = sshll.u32 %s1687_s5, 4  ;;  %s1613_s6 = int_to_ptr.vmem [resolvable:$false] %s1612_s6 }
  0x7b   : > { %409 = vst [vmem:[%s1922_s20 + $0x140] sm:$0xff] %v281_v10  ;;  %410 = vst [vmem:[%s1922_s20 + $0x160] sm:$0xff] %v282_v11  ;;  %v286_v15 = vld [vmem:[%s1904_s26 + $0x78] sm:$0xff]  ;;  %v287_v16 = vld [vmem:[%s1904_s26 + $0x80] sm:$0xff]  ;;  %s1614_s10 = scalar_lea.vmem %s1613_s6, 131072  ;;  %p1615_p12 = scmp.lt.s32.totalorder %s2943_s29, %s1613_s6 }
  0x7c   : > { %411 = vst [vmem:[%s1922_s20 + $0x180] sm:$0xff] %v283_v12  ;;  %412 = vst [vmem:[%s1922_s20 + $0x1a0] sm:$0xff] %v284_v13  ;;  %v288_v17 = vld [vmem:[%s1904_s26 + $0x88] sm:$0xff]  ;;  %v289_v18 = vld [vmem:[%s1904_s26 + $0x90] sm:$0xff]  ;;  %p1611_p6 = pneg %p1610_p9  ;;  %p1616_p0 = scmp.lt.s32.totalorder %s1614_s10, %s1608_s11 }
  0x7d   : > { %413 = vst [vmem:[%s1922_s20 + $0x1c0] sm:$0xff] %v285_v14  ;;  %414 = vst [vmem:[%s1922_s20 + $0x1e0] sm:$0xff] %v286_v15  ;;  %v290_v19 = vld [vmem:[%s1904_s26 + $0x98] sm:$0xff]  ;;  %v291_v20 = vld [vmem:[%s1904_s26 + $0xa0] sm:$0xff] }
  0x7e   : > { %415 = vst [vmem:[%s1922_s20 + $0x200] sm:$0xff] %v287_v16  ;;  %416 = vst [vmem:[%s1922_s20 + $0x220] sm:$0xff] %v288_v17  ;;  %v292_v21 = vld [vmem:[%s1904_s26 + $0xa8] sm:$0xff]  ;;  %v293_v22 = vld [vmem:[%s1904_s26 + $0xb0] sm:$0xff]  ;;  %p1617_p8 = por %p1616_p0, %p1615_p12 }
  0x7f   : > { %417 = vst [vmem:[%s1922_s20 + $0x240] sm:$0xff] %v289_v18  ;;  %418 = vst [vmem:[%s1922_s20 + $0x260] sm:$0xff] %v290_v19  ;;  %v294_v23 = vld [vmem:[%s1904_s26 + $0xb8] sm:$0xff]  ;;  %v295_v24 = vld [vmem:[%s1904_s26 + $0xc0] sm:$0xff] }
  0x80   : > { %419 = vst [vmem:[%s1922_s20 + $0x280] sm:$0xff] %v291_v20  ;;  %420 = vst [vmem:[%s1922_s20 + $0x2a0] sm:$0xff] %v292_v21  ;;  %v296_v25 = vld [vmem:[%s1904_s26 + $0xc8] sm:$0xff]  ;;  %v297_v26 = vld [vmem:[%s1904_s26 + $0xd0] sm:$0xff]  ;;  %p1618_p10 = pnand %p1617_p8, %p1611_p6 }
  0x81   : > { %421 = vst [vmem:[%s1922_s20 + $0x2c0] sm:$0xff] %v293_v22  ;;  %422 = vst [vmem:[%s1922_s20 + $0x2e0] sm:$0xff] %v294_v23  ;;  %v298_v27 = vld [vmem:[%s1904_s26 + $0xd8] sm:$0xff]  ;;  %v299_v28 = vld [vmem:[%s1904_s26 + $0xe0] sm:$0xff] }
  0x82   : > { %423 = vst [vmem:[%s1922_s20 + $0x300] sm:$0xff] %v295_v24  ;;  %424 = vst [vmem:[%s1922_s20 + $0x320] sm:$0xff] %v296_v25  ;;  %v300_v29 = vld [vmem:[%s1904_s26 + $0xe8] sm:$0xff]  ;;  %v301_v30 = vld [vmem:[%s1904_s26 + $0xf0] sm:$0xff] }
  0x83   : > { %425 = vst [vmem:[%s1922_s20 + $0x340] sm:$0xff] %v297_v26  ;;  %426 = vst [vmem:[%s1922_s20 + $0x360] sm:$0xff] %v298_v27  ;;  %v302_v31 = vld [vmem:[%s1904_s26 + $0xf8] sm:$0xff]  ;;  %v303_v32 = vld [vmem:[%s1904_s26 + $0x100] sm:$0xff] }
  0x84   : > { %427 = vst [vmem:[%s1922_s20 + $0x380] sm:$0xff] %v299_v28  ;;  %428 = vst [vmem:[%s1922_s20 + $0x3a0] sm:$0xff] %v300_v29  ;;  %v304_v33 = vld [vmem:[%s1904_s26 + $0x108] sm:$0xff]  ;;  %v305_v34 = vld [vmem:[%s1904_s26 + $0x110] sm:$0xff] }
  0x85   : > { %429 = vst [vmem:[%s1922_s20 + $0x3c0] sm:$0xff] %v301_v30  ;;  %430 = vst [vmem:[%s1922_s20 + $0x3e0] sm:$0xff] %v302_v31  ;;  %v306_v35 = vld [vmem:[%s1904_s26 + $0x118] sm:$0xff]  ;;  %v307_v36 = vld [vmem:[%s1904_s26 + $0x120] sm:$0xff] }
  0x86   : > { %431 = vst [vmem:[%s1922_s20 + $0x400] sm:$0xff] %v303_v32  ;;  %432 = vst [vmem:[%s1922_s20 + $0x420] sm:$0xff] %v304_v33  ;;  %v308_v37 = vld [vmem:[%s1904_s26 + $0x128] sm:$0xff]  ;;  %v309_v38 = vld [vmem:[%s1904_s26 + $0x130] sm:$0xff] }
  0x87   : > { %433 = vst [vmem:[%s1922_s20 + $0x440] sm:$0xff] %v305_v34  ;;  %434 = vst [vmem:[%s1922_s20 + $0x460] sm:$0xff] %v306_v35  ;;  %v310_v39 = vld [vmem:[%s1904_s26 + $0x138] sm:$0xff]  ;;  %v311_v40 = vld [vmem:[%s1904_s26 + $0x140] sm:$0xff] }
  0x88   : > { %435 = vst [vmem:[%s1922_s20 + $0x480] sm:$0xff] %v307_v36  ;;  %436 = vst [vmem:[%s1922_s20 + $0x4a0] sm:$0xff] %v308_v37  ;;  %v312_v41 = vld [vmem:[%s1904_s26 + $0x148] sm:$0xff]  ;;  %v313_v42 = vld [vmem:[%s1904_s26 + $0x150] sm:$0xff] }
  0x89   : > { %437 = vst [vmem:[%s1922_s20 + $0x4c0] sm:$0xff] %v309_v38  ;;  %438 = vst [vmem:[%s1922_s20 + $0x4e0] sm:$0xff] %v310_v39  ;;  %v314_v43 = vld [vmem:[%s1904_s26 + $0x158] sm:$0xff]  ;;  %v315_v44 = vld [vmem:[%s1904_s26 + $0x160] sm:$0xff] }
  0x8a   : > { %439 = vst [vmem:[%s1922_s20 + $0x500] sm:$0xff] %v311_v40  ;;  %440 = vst [vmem:[%s1922_s20 + $0x520] sm:$0xff] %v312_v41  ;;  %v316_v45 = vld [vmem:[%s1904_s26 + $0x168] sm:$0xff]  ;;  %v317_v46 = vld [vmem:[%s1904_s26 + $0x170] sm:$0xff] }
  0x8b   : > { %441 = vst [vmem:[%s1922_s20 + $0x540] sm:$0xff] %v313_v42  ;;  %442 = vst [vmem:[%s1922_s20 + $0x560] sm:$0xff] %v314_v43  ;;  %v318_v47 = vld [vmem:[%s1904_s26 + $0x178] sm:$0xff]  ;;  %v319_v48 = vld [vmem:[%s1904_s26 + $0x180] sm:$0xff] }
  0x8c   : > { %443 = vst [vmem:[%s1922_s20 + $0x580] sm:$0xff] %v315_v44  ;;  %444 = vst [vmem:[%s1922_s20 + $0x5a0] sm:$0xff] %v316_v45  ;;  %v320_v49 = vld [vmem:[%s1904_s26 + $0x188] sm:$0xff]  ;;  %v321_v50 = vld [vmem:[%s1904_s26 + $0x190] sm:$0xff] }
  0x8d   : > { %445 = vst [vmem:[%s1922_s20 + $0x5c0] sm:$0xff] %v317_v46  ;;  %446 = vst [vmem:[%s1922_s20 + $0x5e0] sm:$0xff] %v318_v47  ;;  %v322_v51 = vld [vmem:[%s1904_s26 + $0x198] sm:$0xff]  ;;  %v323_v52 = vld [vmem:[%s1904_s26 + $0x1a0] sm:$0xff] }
  0x8e   : > { %447 = vst [vmem:[%s1922_s20 + $0x600] sm:$0xff] %v319_v48  ;;  %448 = vst [vmem:[%s1922_s20 + $0x620] sm:$0xff] %v320_v49  ;;  %v324_v53 = vld [vmem:[%s1904_s26 + $0x1a8] sm:$0xff]  ;;  %v325_v54 = vld [vmem:[%s1904_s26 + $0x1b0] sm:$0xff] }
  0x8f   : > { %449 = vst [vmem:[%s1922_s20 + $0x640] sm:$0xff] %v321_v50  ;;  %450 = vst [vmem:[%s1922_s20 + $0x660] sm:$0xff] %v322_v51  ;;  %v326_v55 = vld [vmem:[%s1904_s26 + $0x1b8] sm:$0xff]  ;;  %v327_v56 = vld [vmem:[%s1904_s26 + $0x1c0] sm:$0xff] }
  0x90   : > { %451 = vst [vmem:[%s1922_s20 + $0x680] sm:$0xff] %v323_v52  ;;  %452 = vst [vmem:[%s1922_s20 + $0x6a0] sm:$0xff] %v324_v53  ;;  %v328_v57 = vld [vmem:[%s1904_s26 + $0x1c8] sm:$0xff]  ;;  %v329_v58 = vld [vmem:[%s1904_s26 + $0x1d0] sm:$0xff] }
  0x91   : > { %453 = vst [vmem:[%s1922_s20 + $0x6c0] sm:$0xff] %v325_v54  ;;  %454 = vst [vmem:[%s1922_s20 + $0x6e0] sm:$0xff] %v326_v55  ;;  %v330_v59 = vld [vmem:[%s1904_s26 + $0x1d8] sm:$0xff]  ;;  %v331_v60 = vld [vmem:[%s1904_s26 + $0x1e0] sm:$0xff] }
  0x92   : > { %455 = vst [vmem:[%s1922_s20 + $0x700] sm:$0xff] %v327_v56  ;;  %456 = vst [vmem:[%s1922_s20 + $0x720] sm:$0xff] %v328_v57  ;;  %v332_v61 = vld [vmem:[%s1904_s26 + $0x1e8] sm:$0xff]  ;;  %v333_v62 = vld [vmem:[%s1904_s26 + $0x1f0] sm:$0xff] }
  0x93   : > { %457 = vst [vmem:[%s1922_s20 + $0x740] sm:$0xff] %v329_v58  ;;  %458 = vst [vmem:[%s1922_s20 + $0x760] sm:$0xff] %v330_v59  ;;  %v334_v63 = vld [vmem:[%s1904_s26 + $0x1f8] sm:$0xff]  ;;  %v335_v0 = vld [vmem:[%s1904_s26 + $0x200] sm:$0xff] }
  0x94   : > { %459 = vst [vmem:[%s1922_s20 + $0x780] sm:$0xff] %v331_v60  ;;  %460 = vst [vmem:[%s1922_s20 + $0x7a0] sm:$0xff] %v332_v61  ;;  %v336_v1 = vld [vmem:[%s1904_s26 + $0x208] sm:$0xff]  ;;  %v337_v2 = vld [vmem:[%s1904_s26 + $0x210] sm:$0xff] }
  0x95   : > { %461 = vst [vmem:[%s1922_s20 + $0x7c0] sm:$0xff] %v333_v62  ;;  %462 = vst [vmem:[%s1922_s20 + $0x7e0] sm:$0xff] %v334_v63  ;;  %v338_v3 = vld [vmem:[%s1904_s26 + $0x218] sm:$0xff]  ;;  %v339_v4 = vld [vmem:[%s1904_s26 + $0x220] sm:$0xff] }
  0x96   : > { %463 = vst [vmem:[%s1922_s20 + $0x800] sm:$0xff] %v335_v0  ;;  %464 = vst [vmem:[%s1922_s20 + $0x820] sm:$0xff] %v336_v1  ;;  %v340_v5 = vld [vmem:[%s1904_s26 + $0x228] sm:$0xff]  ;;  %v341_v6 = vld [vmem:[%s1904_s26 + $0x230] sm:$0xff] }
  0x97   : > { %465 = vst [vmem:[%s1922_s20 + $0x840] sm:$0xff] %v337_v2  ;;  %466 = vst [vmem:[%s1922_s20 + $0x860] sm:$0xff] %v338_v3  ;;  %v342_v7 = vld [vmem:[%s1904_s26 + $0x238] sm:$0xff]  ;;  %v343_v8 = vld [vmem:[%s1904_s26 + $0x240] sm:$0xff] }
  0x98   : > { %467 = vst [vmem:[%s1922_s20 + $0x880] sm:$0xff] %v339_v4  ;;  %468 = vst [vmem:[%s1922_s20 + $0x8a0] sm:$0xff] %v340_v5  ;;  %v344_v9 = vld [vmem:[%s1904_s26 + $0x248] sm:$0xff]  ;;  %v345_v10 = vld [vmem:[%s1904_s26 + $0x250] sm:$0xff] }
  0x99   : > { %469 = vst [vmem:[%s1922_s20 + $0x8c0] sm:$0xff] %v341_v6  ;;  %470 = vst [vmem:[%s1922_s20 + $0x8e0] sm:$0xff] %v342_v7  ;;  %v346_v11 = vld [vmem:[%s1904_s26 + $0x258] sm:$0xff]  ;;  %v347_v12 = vld [vmem:[%s1904_s26 + $0x260] sm:$0xff] }
  0x9a   : > { %471 = vst [vmem:[%s1922_s20 + $0x900] sm:$0xff] %v343_v8  ;;  %472 = vst [vmem:[%s1922_s20 + $0x920] sm:$0xff] %v344_v9  ;;  %v348_v13 = vld [vmem:[%s1904_s26 + $0x268] sm:$0xff]  ;;  %v349_v14 = vld [vmem:[%s1904_s26 + $0x270] sm:$0xff] }
  0x9b   : > { %473 = vst [vmem:[%s1922_s20 + $0x940] sm:$0xff] %v345_v10  ;;  %474 = vst [vmem:[%s1922_s20 + $0x960] sm:$0xff] %v346_v11  ;;  %v350_v15 = vld [vmem:[%s1904_s26 + $0x278] sm:$0xff]  ;;  %v351_v16 = vld [vmem:[%s1904_s26 + $0x280] sm:$0xff] }
  0x9c   : > { %475 = vst [vmem:[%s1922_s20 + $0x980] sm:$0xff] %v347_v12  ;;  %476 = vst [vmem:[%s1922_s20 + $0x9a0] sm:$0xff] %v348_v13  ;;  %v352_v17 = vld [vmem:[%s1904_s26 + $0x288] sm:$0xff]  ;;  %v353_v18 = vld [vmem:[%s1904_s26 + $0x290] sm:$0xff] }
  0x9d   : > { %477 = vst [vmem:[%s1922_s20 + $0x9c0] sm:$0xff] %v349_v14  ;;  %478 = vst [vmem:[%s1922_s20 + $0x9e0] sm:$0xff] %v350_v15  ;;  %v354_v19 = vld [vmem:[%s1904_s26 + $0x298] sm:$0xff]  ;;  %v355_v20 = vld [vmem:[%s1904_s26 + $0x2a0] sm:$0xff] }
  0x9e   : > { %479 = vst [vmem:[%s1922_s20 + $0xa00] sm:$0xff] %v351_v16  ;;  %480 = vst [vmem:[%s1922_s20 + $0xa20] sm:$0xff] %v352_v17  ;;  %v356_v21 = vld [vmem:[%s1904_s26 + $0x2a8] sm:$0xff]  ;;  %v357_v22 = vld [vmem:[%s1904_s26 + $0x2b0] sm:$0xff] }
  0x9f   : > { %481 = vst [vmem:[%s1922_s20 + $0xa40] sm:$0xff] %v353_v18  ;;  %482 = vst [vmem:[%s1922_s20 + $0xa60] sm:$0xff] %v354_v19  ;;  %v358_v23 = vld [vmem:[%s1904_s26 + $0x2b8] sm:$0xff]  ;;  %v359_v24 = vld [vmem:[%s1904_s26 + $0x2c0] sm:$0xff] }
  0xa0   : > { %483 = vst [vmem:[%s1922_s20 + $0xa80] sm:$0xff] %v355_v20  ;;  %484 = vst [vmem:[%s1922_s20 + $0xaa0] sm:$0xff] %v356_v21  ;;  %v360_v25 = vld [vmem:[%s1904_s26 + $0x2c8] sm:$0xff]  ;;  %v361_v26 = vld [vmem:[%s1904_s26 + $0x2d0] sm:$0xff] }
  0xa1   : > { %485 = vst [vmem:[%s1922_s20 + $0xac0] sm:$0xff] %v357_v22  ;;  %486 = vst [vmem:[%s1922_s20 + $0xae0] sm:$0xff] %v358_v23  ;;  %v362_v27 = vld [vmem:[%s1904_s26 + $0x2d8] sm:$0xff]  ;;  %v363_v28 = vld [vmem:[%s1904_s26 + $0x2e0] sm:$0xff] }
  0xa2   : > { %487 = vst [vmem:[%s1922_s20 + $0xb00] sm:$0xff] %v359_v24  ;;  %488 = vst [vmem:[%s1922_s20 + $0xb20] sm:$0xff] %v360_v25  ;;  %v364_v29 = vld [vmem:[%s1904_s26 + $0x2e8] sm:$0xff]  ;;  %v365_v30 = vld [vmem:[%s1904_s26 + $0x2f0] sm:$0xff] }
  0xa3   : > { %489 = vst [vmem:[%s1922_s20 + $0xb40] sm:$0xff] %v361_v26  ;;  %490 = vst [vmem:[%s1922_s20 + $0xb60] sm:$0xff] %v362_v27  ;;  %v366_v31 = vld [vmem:[%s1904_s26 + $0x2f8] sm:$0xff]  ;;  %v367_v32 = vld [vmem:[%s1904_s26 + $0x300] sm:$0xff] }
  0xa4   : > { %491 = vst [vmem:[%s1922_s20 + $0xb80] sm:$0xff] %v363_v28  ;;  %492 = vst [vmem:[%s1922_s20 + $0xba0] sm:$0xff] %v364_v29  ;;  %v368_v33 = vld [vmem:[%s1904_s26 + $0x308] sm:$0xff]  ;;  %v369_v34 = vld [vmem:[%s1904_s26 + $0x310] sm:$0xff] }
  0xa5   : > { %493 = vst [vmem:[%s1922_s20 + $0xbc0] sm:$0xff] %v365_v30  ;;  %494 = vst [vmem:[%s1922_s20 + $0xbe0] sm:$0xff] %v366_v31  ;;  %v370_v35 = vld [vmem:[%s1904_s26 + $0x318] sm:$0xff]  ;;  %v371_v36 = vld [vmem:[%s1904_s26 + $0x320] sm:$0xff] }
  0xa6   : > { %495 = vst [vmem:[%s1922_s20 + $0xc00] sm:$0xff] %v367_v32  ;;  %496 = vst [vmem:[%s1922_s20 + $0xc20] sm:$0xff] %v368_v33  ;;  %v372_v37 = vld [vmem:[%s1904_s26 + $0x328] sm:$0xff]  ;;  %v373_v38 = vld [vmem:[%s1904_s26 + $0x330] sm:$0xff] }
  0xa7   : > { %497 = vst [vmem:[%s1922_s20 + $0xc40] sm:$0xff] %v369_v34  ;;  %498 = vst [vmem:[%s1922_s20 + $0xc60] sm:$0xff] %v370_v35  ;;  %v374_v39 = vld [vmem:[%s1904_s26 + $0x338] sm:$0xff]  ;;  %v375_v40 = vld [vmem:[%s1904_s26 + $0x340] sm:$0xff] }
  0xa8   : > { %499 = vst [vmem:[%s1922_s20 + $0xc80] sm:$0xff] %v371_v36  ;;  %500 = vst [vmem:[%s1922_s20 + $0xca0] sm:$0xff] %v372_v37  ;;  %v376_v41 = vld [vmem:[%s1904_s26 + $0x348] sm:$0xff]  ;;  %v377_v42 = vld [vmem:[%s1904_s26 + $0x350] sm:$0xff] }
  0xa9   : > { %501 = vst [vmem:[%s1922_s20 + $0xcc0] sm:$0xff] %v373_v38  ;;  %502 = vst [vmem:[%s1922_s20 + $0xce0] sm:$0xff] %v374_v39  ;;  %v378_v43 = vld [vmem:[%s1904_s26 + $0x358] sm:$0xff]  ;;  %v379_v44 = vld [vmem:[%s1904_s26 + $0x360] sm:$0xff] }
  0xaa   : > { %503 = vst [vmem:[%s1922_s20 + $0xd00] sm:$0xff] %v375_v40  ;;  %504 = vst [vmem:[%s1922_s20 + $0xd20] sm:$0xff] %v376_v41  ;;  %v380_v45 = vld [vmem:[%s1904_s26 + $0x368] sm:$0xff]  ;;  %v381_v46 = vld [vmem:[%s1904_s26 + $0x370] sm:$0xff] }
  0xab   : > { %505 = vst [vmem:[%s1922_s20 + $0xd40] sm:$0xff] %v377_v42  ;;  %506 = vst [vmem:[%s1922_s20 + $0xd60] sm:$0xff] %v378_v43  ;;  %v382_v47 = vld [vmem:[%s1904_s26 + $0x378] sm:$0xff]  ;;  %v383_v48 = vld [vmem:[%s1904_s26 + $0x380] sm:$0xff] }
  0xac   : > { %507 = vst [vmem:[%s1922_s20 + $0xd80] sm:$0xff] %v379_v44  ;;  %508 = vst [vmem:[%s1922_s20 + $0xda0] sm:$0xff] %v380_v45  ;;  %v384_v49 = vld [vmem:[%s1904_s26 + $0x388] sm:$0xff]  ;;  %v385_v50 = vld [vmem:[%s1904_s26 + $0x390] sm:$0xff] }
  0xad   : > { %509 = vst [vmem:[%s1922_s20 + $0xdc0] sm:$0xff] %v381_v46  ;;  %510 = vst [vmem:[%s1922_s20 + $0xde0] sm:$0xff] %v382_v47  ;;  %v386_v51 = vld [vmem:[%s1904_s26 + $0x398] sm:$0xff]  ;;  %v387_v52 = vld [vmem:[%s1904_s26 + $0x3a0] sm:$0xff] }
  0xae   : > { %511 = vst [vmem:[%s1922_s20 + $0xe00] sm:$0xff] %v383_v48  ;;  %512 = vst [vmem:[%s1922_s20 + $0xe20] sm:$0xff] %v384_v49  ;;  %v388_v53 = vld [vmem:[%s1904_s26 + $0x3a8] sm:$0xff]  ;;  %v389_v54 = vld [vmem:[%s1904_s26 + $0x3b0] sm:$0xff] }
  0xaf   : > { %513 = vst [vmem:[%s1922_s20 + $0xe40] sm:$0xff] %v385_v50  ;;  %514 = vst [vmem:[%s1922_s20 + $0xe60] sm:$0xff] %v386_v51  ;;  %v390_v55 = vld [vmem:[%s1904_s26 + $0x3b8] sm:$0xff]  ;;  %v391_v56 = vld [vmem:[%s1904_s26 + $0x3c0] sm:$0xff] }
  0xb0   : > { %515 = vst [vmem:[%s1922_s20 + $0xe80] sm:$0xff] %v387_v52  ;;  %516 = vst [vmem:[%s1922_s20 + $0xea0] sm:$0xff] %v388_v53  ;;  %v392_v57 = vld [vmem:[%s1904_s26 + $0x3c8] sm:$0xff]  ;;  %v393_v58 = vld [vmem:[%s1904_s26 + $0x3d0] sm:$0xff] }
  0xb1   : > { %517 = vst [vmem:[%s1922_s20 + $0xec0] sm:$0xff] %v389_v54  ;;  %518 = vst [vmem:[%s1922_s20 + $0xee0] sm:$0xff] %v390_v55  ;;  %v394_v59 = vld [vmem:[%s1904_s26 + $0x3d8] sm:$0xff]  ;;  %v395_v60 = vld [vmem:[%s1904_s26 + $0x3e0] sm:$0xff] }
  0xb2   : > { %519 = vst [vmem:[%s1922_s20 + $0xf00] sm:$0xff] %v391_v56  ;;  %520 = vst [vmem:[%s1922_s20 + $0xf20] sm:$0xff] %v392_v57  ;;  %v396_v61 = vld [vmem:[%s1904_s26 + $0x3e8] sm:$0xff]  ;;  %v397_v62 = vld [vmem:[%s1904_s26 + $0x3f0] sm:$0xff] }
  0xb3   : > { %521 = vst [vmem:[%s1922_s20 + $0xf40] sm:$0xff] %v393_v58  ;;  %522 = vst [vmem:[%s1922_s20 + $0xf60] sm:$0xff] %v394_v59  ;;  %v398_v63 = vld [vmem:[%s1904_s26 + $0x3f8] sm:$0xff]  ;;  %v527_v0 = vld [vmem:[%s1912_s9] sm:$0xff] }
  0xb4   : > { %523 = vst [vmem:[%s1922_s20 + $0xf80] sm:$0xff] %v395_v60  ;;  %524 = vst [vmem:[%s1922_s20 + $0xfa0] sm:$0xff] %v396_v61  ;;  %v528_v1 = vld [vmem:[%s1912_s9 + $0x8] sm:$0xff]  ;;  %v529_v2 = vld [vmem:[%s1912_s9 + $0x10] sm:$0xff] }
  0xb5   : > { %525 = vst [vmem:[%s1922_s20 + $0xfc0] sm:$0xff] %v397_v62  ;;  %526 = vst [vmem:[%s1922_s20 + $0xfe0] sm:$0xff] %v398_v63  ;;  %v530_v3 = vld [vmem:[%s1912_s9 + $0x18] sm:$0xff]  ;;  %v531_v4 = vld [vmem:[%s1912_s9 + $0x20] sm:$0xff] }
  0xb6   : > { %783 = vst [vmem:[%s1922_s20 + $0x8] sm:$0xff] %v527_v0  ;;  %784 = vst [vmem:[%s1922_s20 + $0x10] sm:$0xff] %v528_v1  ;;  %v532_v5 = vld [vmem:[%s1912_s9 + $0x28] sm:$0xff]  ;;  %v533_v6 = vld [vmem:[%s1912_s9 + $0x30] sm:$0xff] }
  0xb7   : > { %785 = vst [vmem:[%s1922_s20 + $0x28] sm:$0xff] %v529_v2  ;;  %786 = vst [vmem:[%s1922_s20 + $0x30] sm:$0xff] %v530_v3  ;;  %v534_v7 = vld [vmem:[%s1912_s9 + $0x38] sm:$0xff]  ;;  %v535_v8 = vld [vmem:[%s1912_s9 + $0x40] sm:$0xff] }
  0xb8   : > { %787 = vst [vmem:[%s1922_s20 + $0x48] sm:$0xff] %v531_v4  ;;  %788 = vst [vmem:[%s1922_s20 + $0x50] sm:$0xff] %v532_v5  ;;  %v536_v9 = vld [vmem:[%s1912_s9 + $0x48] sm:$0xff]  ;;  %v537_v10 = vld [vmem:[%s1912_s9 + $0x50] sm:$0xff] }
  0xb9   : > { %789 = vst [vmem:[%s1922_s20 + $0x68] sm:$0xff] %v533_v6  ;;  %790 = vst [vmem:[%s1922_s20 + $0x70] sm:$0xff] %v534_v7  ;;  %v538_v11 = vld [vmem:[%s1912_s9 + $0x58] sm:$0xff]  ;;  %v539_v12 = vld [vmem:[%s1912_s9 + $0x60] sm:$0xff] }
  0xba   : > { %791 = vst [vmem:[%s1922_s20 + $0x88] sm:$0xff] %v535_v8  ;;  %792 = vst [vmem:[%s1922_s20 + $0x90] sm:$0xff] %v536_v9  ;;  %v540_v13 = vld [vmem:[%s1912_s9 + $0x68] sm:$0xff]  ;;  %v541_v14 = vld [vmem:[%s1912_s9 + $0x70] sm:$0xff] }
  0xbb   : > { %793 = vst [vmem:[%s1922_s20 + $0xa8] sm:$0xff] %v537_v10  ;;  %794 = vst [vmem:[%s1922_s20 + $0xb0] sm:$0xff] %v538_v11  ;;  %v542_v15 = vld [vmem:[%s1912_s9 + $0x78] sm:$0xff]  ;;  %v543_v16 = vld [vmem:[%s1912_s9 + $0x80] sm:$0xff] }
  0xbc   : > { %795 = vst [vmem:[%s1922_s20 + $0xc8] sm:$0xff] %v539_v12  ;;  %796 = vst [vmem:[%s1922_s20 + $0xd0] sm:$0xff] %v540_v13  ;;  %v544_v17 = vld [vmem:[%s1912_s9 + $0x88] sm:$0xff]  ;;  %v545_v18 = vld [vmem:[%s1912_s9 + $0x90] sm:$0xff] }
  0xbd   : > { %797 = vst [vmem:[%s1922_s20 + $0xe8] sm:$0xff] %v541_v14  ;;  %798 = vst [vmem:[%s1922_s20 + $0xf0] sm:$0xff] %v542_v15  ;;  %v546_v19 = vld [vmem:[%s1912_s9 + $0x98] sm:$0xff]  ;;  %v547_v20 = vld [vmem:[%s1912_s9 + $0xa0] sm:$0xff] }
  0xbe   : > { %799 = vst [vmem:[%s1922_s20 + $0x108] sm:$0xff] %v543_v16  ;;  %800 = vst [vmem:[%s1922_s20 + $0x110] sm:$0xff] %v544_v17  ;;  %v548_v21 = vld [vmem:[%s1912_s9 + $0xa8] sm:$0xff]  ;;  %v549_v22 = vld [vmem:[%s1912_s9 + $0xb0] sm:$0xff] }
  0xbf   : > { %801 = vst [vmem:[%s1922_s20 + $0x128] sm:$0xff] %v545_v18  ;;  %802 = vst [vmem:[%s1922_s20 + $0x130] sm:$0xff] %v546_v19  ;;  %v550_v23 = vld [vmem:[%s1912_s9 + $0xb8] sm:$0xff]  ;;  %v551_v24 = vld [vmem:[%s1912_s9 + $0xc0] sm:$0xff] }
  0xc0   : > { %803 = vst [vmem:[%s1922_s20 + $0x148] sm:$0xff] %v547_v20  ;;  %804 = vst [vmem:[%s1922_s20 + $0x150] sm:$0xff] %v548_v21  ;;  %v552_v25 = vld [vmem:[%s1912_s9 + $0xc8] sm:$0xff]  ;;  %v553_v26 = vld [vmem:[%s1912_s9 + $0xd0] sm:$0xff] }
  0xc1   : > { %805 = vst [vmem:[%s1922_s20 + $0x168] sm:$0xff] %v549_v22  ;;  %806 = vst [vmem:[%s1922_s20 + $0x170] sm:$0xff] %v550_v23  ;;  %v554_v27 = vld [vmem:[%s1912_s9 + $0xd8] sm:$0xff]  ;;  %v555_v28 = vld [vmem:[%s1912_s9 + $0xe0] sm:$0xff] }
  0xc2   : > { %807 = vst [vmem:[%s1922_s20 + $0x188] sm:$0xff] %v551_v24  ;;  %808 = vst [vmem:[%s1922_s20 + $0x190] sm:$0xff] %v552_v25  ;;  %v556_v29 = vld [vmem:[%s1912_s9 + $0xe8] sm:$0xff]  ;;  %v557_v30 = vld [vmem:[%s1912_s9 + $0xf0] sm:$0xff] }
  0xc3   : > { %809 = vst [vmem:[%s1922_s20 + $0x1a8] sm:$0xff] %v553_v26  ;;  %810 = vst [vmem:[%s1922_s20 + $0x1b0] sm:$0xff] %v554_v27  ;;  %v558_v31 = vld [vmem:[%s1912_s9 + $0xf8] sm:$0xff]  ;;  %v559_v32 = vld [vmem:[%s1912_s9 + $0x100] sm:$0xff] }
  0xc4   : > { %811 = vst [vmem:[%s1922_s20 + $0x1c8] sm:$0xff] %v555_v28  ;;  %812 = vst [vmem:[%s1922_s20 + $0x1d0] sm:$0xff] %v556_v29  ;;  %v560_v33 = vld [vmem:[%s1912_s9 + $0x108] sm:$0xff]  ;;  %v561_v34 = vld [vmem:[%s1912_s9 + $0x110] sm:$0xff] }
  0xc5   : > { %813 = vst [vmem:[%s1922_s20 + $0x1e8] sm:$0xff] %v557_v30  ;;  %814 = vst [vmem:[%s1922_s20 + $0x1f0] sm:$0xff] %v558_v31  ;;  %v562_v35 = vld [vmem:[%s1912_s9 + $0x118] sm:$0xff]  ;;  %v563_v36 = vld [vmem:[%s1912_s9 + $0x120] sm:$0xff] }
  0xc6   : > { %815 = vst [vmem:[%s1922_s20 + $0x208] sm:$0xff] %v559_v32  ;;  %816 = vst [vmem:[%s1922_s20 + $0x210] sm:$0xff] %v560_v33  ;;  %v564_v37 = vld [vmem:[%s1912_s9 + $0x128] sm:$0xff]  ;;  %v565_v38 = vld [vmem:[%s1912_s9 + $0x130] sm:$0xff] }
  0xc7   : > { %817 = vst [vmem:[%s1922_s20 + $0x228] sm:$0xff] %v561_v34  ;;  %818 = vst [vmem:[%s1922_s20 + $0x230] sm:$0xff] %v562_v35  ;;  %v566_v39 = vld [vmem:[%s1912_s9 + $0x138] sm:$0xff]  ;;  %v567_v40 = vld [vmem:[%s1912_s9 + $0x140] sm:$0xff] }
  0xc8   : > { %819 = vst [vmem:[%s1922_s20 + $0x248] sm:$0xff] %v563_v36  ;;  %820 = vst [vmem:[%s1922_s20 + $0x250] sm:$0xff] %v564_v37  ;;  %v568_v41 = vld [vmem:[%s1912_s9 + $0x148] sm:$0xff]  ;;  %v569_v42 = vld [vmem:[%s1912_s9 + $0x150] sm:$0xff] }
  0xc9   : > { %821 = vst [vmem:[%s1922_s20 + $0x268] sm:$0xff] %v565_v38  ;;  %822 = vst [vmem:[%s1922_s20 + $0x270] sm:$0xff] %v566_v39  ;;  %v570_v43 = vld [vmem:[%s1912_s9 + $0x158] sm:$0xff]  ;;  %v571_v44 = vld [vmem:[%s1912_s9 + $0x160] sm:$0xff] }
  0xca   : > { %823 = vst [vmem:[%s1922_s20 + $0x288] sm:$0xff] %v567_v40  ;;  %824 = vst [vmem:[%s1922_s20 + $0x290] sm:$0xff] %v568_v41  ;;  %v572_v45 = vld [vmem:[%s1912_s9 + $0x168] sm:$0xff]  ;;  %v573_v46 = vld [vmem:[%s1912_s9 + $0x170] sm:$0xff] }
  0xcb   : > { %825 = vst [vmem:[%s1922_s20 + $0x2a8] sm:$0xff] %v569_v42  ;;  %826 = vst [vmem:[%s1922_s20 + $0x2b0] sm:$0xff] %v570_v43  ;;  %v574_v47 = vld [vmem:[%s1912_s9 + $0x178] sm:$0xff]  ;;  %v575_v48 = vld [vmem:[%s1912_s9 + $0x180] sm:$0xff] }
  0xcc   : > { %827 = vst [vmem:[%s1922_s20 + $0x2c8] sm:$0xff] %v571_v44  ;;  %828 = vst [vmem:[%s1922_s20 + $0x2d0] sm:$0xff] %v572_v45  ;;  %v576_v49 = vld [vmem:[%s1912_s9 + $0x188] sm:$0xff]  ;;  %v577_v50 = vld [vmem:[%s1912_s9 + $0x190] sm:$0xff] }
  0xcd   : > { %829 = vst [vmem:[%s1922_s20 + $0x2e8] sm:$0xff] %v573_v46  ;;  %830 = vst [vmem:[%s1922_s20 + $0x2f0] sm:$0xff] %v574_v47  ;;  %v578_v51 = vld [vmem:[%s1912_s9 + $0x198] sm:$0xff]  ;;  %v579_v52 = vld [vmem:[%s1912_s9 + $0x1a0] sm:$0xff] }
  0xce   : > { %831 = vst [vmem:[%s1922_s20 + $0x308] sm:$0xff] %v575_v48  ;;  %832 = vst [vmem:[%s1922_s20 + $0x310] sm:$0xff] %v576_v49  ;;  %v580_v53 = vld [vmem:[%s1912_s9 + $0x1a8] sm:$0xff]  ;;  %v581_v54 = vld [vmem:[%s1912_s9 + $0x1b0] sm:$0xff] }
  0xcf   : > { %833 = vst [vmem:[%s1922_s20 + $0x328] sm:$0xff] %v577_v50  ;;  %834 = vst [vmem:[%s1922_s20 + $0x330] sm:$0xff] %v578_v51  ;;  %v582_v55 = vld [vmem:[%s1912_s9 + $0x1b8] sm:$0xff]  ;;  %v583_v56 = vld [vmem:[%s1912_s9 + $0x1c0] sm:$0xff] }
  0xd0   : > { %835 = vst [vmem:[%s1922_s20 + $0x348] sm:$0xff] %v579_v52  ;;  %836 = vst [vmem:[%s1922_s20 + $0x350] sm:$0xff] %v580_v53  ;;  %v584_v57 = vld [vmem:[%s1912_s9 + $0x1c8] sm:$0xff]  ;;  %v585_v58 = vld [vmem:[%s1912_s9 + $0x1d0] sm:$0xff] }
  0xd1   : > { %837 = vst [vmem:[%s1922_s20 + $0x368] sm:$0xff] %v581_v54  ;;  %838 = vst [vmem:[%s1922_s20 + $0x370] sm:$0xff] %v582_v55  ;;  %v586_v59 = vld [vmem:[%s1912_s9 + $0x1d8] sm:$0xff]  ;;  %v587_v60 = vld [vmem:[%s1912_s9 + $0x1e0] sm:$0xff] }
  0xd2   : > { %839 = vst [vmem:[%s1922_s20 + $0x388] sm:$0xff] %v583_v56  ;;  %840 = vst [vmem:[%s1922_s20 + $0x390] sm:$0xff] %v584_v57  ;;  %v588_v61 = vld [vmem:[%s1912_s9 + $0x1e8] sm:$0xff]  ;;  %v589_v62 = vld [vmem:[%s1912_s9 + $0x1f0] sm:$0xff] }
  0xd3   : > { %841 = vst [vmem:[%s1922_s20 + $0x3a8] sm:$0xff] %v585_v58  ;;  %842 = vst [vmem:[%s1922_s20 + $0x3b0] sm:$0xff] %v586_v59  ;;  %v590_v63 = vld [vmem:[%s1912_s9 + $0x1f8] sm:$0xff]  ;;  %v591_v0 = vld [vmem:[%s1912_s9 + $0x200] sm:$0xff] }
  0xd4   : > { %843 = vst [vmem:[%s1922_s20 + $0x3c8] sm:$0xff] %v587_v60  ;;  %844 = vst [vmem:[%s1922_s20 + $0x3d0] sm:$0xff] %v588_v61  ;;  %v592_v1 = vld [vmem:[%s1912_s9 + $0x208] sm:$0xff]  ;;  %v593_v2 = vld [vmem:[%s1912_s9 + $0x210] sm:$0xff] }
  0xd5   : > { %845 = vst [vmem:[%s1922_s20 + $0x3e8] sm:$0xff] %v589_v62  ;;  %846 = vst [vmem:[%s1922_s20 + $0x3f0] sm:$0xff] %v590_v63  ;;  %v594_v3 = vld [vmem:[%s1912_s9 + $0x218] sm:$0xff]  ;;  %v595_v4 = vld [vmem:[%s1912_s9 + $0x220] sm:$0xff] }
  0xd6   : > { %847 = vst [vmem:[%s1922_s20 + $0x408] sm:$0xff] %v591_v0  ;;  %848 = vst [vmem:[%s1922_s20 + $0x410] sm:$0xff] %v592_v1  ;;  %v596_v5 = vld [vmem:[%s1912_s9 + $0x228] sm:$0xff]  ;;  %v597_v6 = vld [vmem:[%s1912_s9 + $0x230] sm:$0xff] }
  0xd7   : > { %849 = vst [vmem:[%s1922_s20 + $0x428] sm:$0xff] %v593_v2  ;;  %850 = vst [vmem:[%s1922_s20 + $0x430] sm:$0xff] %v594_v3  ;;  %v598_v7 = vld [vmem:[%s1912_s9 + $0x238] sm:$0xff]  ;;  %v599_v8 = vld [vmem:[%s1912_s9 + $0x240] sm:$0xff] }
  0xd8   : > { %851 = vst [vmem:[%s1922_s20 + $0x448] sm:$0xff] %v595_v4  ;;  %852 = vst [vmem:[%s1922_s20 + $0x450] sm:$0xff] %v596_v5  ;;  %v600_v9 = vld [vmem:[%s1912_s9 + $0x248] sm:$0xff]  ;;  %v601_v10 = vld [vmem:[%s1912_s9 + $0x250] sm:$0xff] }
  0xd9   : > { %853 = vst [vmem:[%s1922_s20 + $0x468] sm:$0xff] %v597_v6  ;;  %854 = vst [vmem:[%s1922_s20 + $0x470] sm:$0xff] %v598_v7  ;;  %v602_v11 = vld [vmem:[%s1912_s9 + $0x258] sm:$0xff]  ;;  %v603_v12 = vld [vmem:[%s1912_s9 + $0x260] sm:$0xff] }
  0xda   : > { %855 = vst [vmem:[%s1922_s20 + $0x488] sm:$0xff] %v599_v8  ;;  %856 = vst [vmem:[%s1922_s20 + $0x490] sm:$0xff] %v600_v9  ;;  %v604_v13 = vld [vmem:[%s1912_s9 + $0x268] sm:$0xff]  ;;  %v605_v14 = vld [vmem:[%s1912_s9 + $0x270] sm:$0xff] }
  0xdb   : > { %857 = vst [vmem:[%s1922_s20 + $0x4a8] sm:$0xff] %v601_v10  ;;  %858 = vst [vmem:[%s1922_s20 + $0x4b0] sm:$0xff] %v602_v11  ;;  %v606_v15 = vld [vmem:[%s1912_s9 + $0x278] sm:$0xff]  ;;  %v607_v16 = vld [vmem:[%s1912_s9 + $0x280] sm:$0xff] }
  0xdc   : > { %859 = vst [vmem:[%s1922_s20 + $0x4c8] sm:$0xff] %v603_v12  ;;  %860 = vst [vmem:[%s1922_s20 + $0x4d0] sm:$0xff] %v604_v13  ;;  %v608_v17 = vld [vmem:[%s1912_s9 + $0x288] sm:$0xff]  ;;  %v609_v18 = vld [vmem:[%s1912_s9 + $0x290] sm:$0xff] }
  0xdd   : > { %861 = vst [vmem:[%s1922_s20 + $0x4e8] sm:$0xff] %v605_v14  ;;  %862 = vst [vmem:[%s1922_s20 + $0x4f0] sm:$0xff] %v606_v15  ;;  %v610_v19 = vld [vmem:[%s1912_s9 + $0x298] sm:$0xff]  ;;  %v611_v20 = vld [vmem:[%s1912_s9 + $0x2a0] sm:$0xff] }
  0xde   : > { %863 = vst [vmem:[%s1922_s20 + $0x508] sm:$0xff] %v607_v16  ;;  %864 = vst [vmem:[%s1922_s20 + $0x510] sm:$0xff] %v608_v17  ;;  %v612_v21 = vld [vmem:[%s1912_s9 + $0x2a8] sm:$0xff]  ;;  %v613_v22 = vld [vmem:[%s1912_s9 + $0x2b0] sm:$0xff] }
  0xdf   : > { %865 = vst [vmem:[%s1922_s20 + $0x528] sm:$0xff] %v609_v18  ;;  %866 = vst [vmem:[%s1922_s20 + $0x530] sm:$0xff] %v610_v19  ;;  %v614_v23 = vld [vmem:[%s1912_s9 + $0x2b8] sm:$0xff]  ;;  %v615_v24 = vld [vmem:[%s1912_s9 + $0x2c0] sm:$0xff] }
  0xe0   : > { %867 = vst [vmem:[%s1922_s20 + $0x548] sm:$0xff] %v611_v20  ;;  %868 = vst [vmem:[%s1922_s20 + $0x550] sm:$0xff] %v612_v21  ;;  %v616_v25 = vld [vmem:[%s1912_s9 + $0x2c8] sm:$0xff]  ;;  %v617_v26 = vld [vmem:[%s1912_s9 + $0x2d0] sm:$0xff] }
  0xe1   : > { %869 = vst [vmem:[%s1922_s20 + $0x568] sm:$0xff] %v613_v22  ;;  %870 = vst [vmem:[%s1922_s20 + $0x570] sm:$0xff] %v614_v23  ;;  %v618_v27 = vld [vmem:[%s1912_s9 + $0x2d8] sm:$0xff]  ;;  %v619_v28 = vld [vmem:[%s1912_s9 + $0x2e0] sm:$0xff] }
  0xe2   : > { %871 = vst [vmem:[%s1922_s20 + $0x588] sm:$0xff] %v615_v24  ;;  %872 = vst [vmem:[%s1922_s20 + $0x590] sm:$0xff] %v616_v25  ;;  %v620_v29 = vld [vmem:[%s1912_s9 + $0x2e8] sm:$0xff]  ;;  %v621_v30 = vld [vmem:[%s1912_s9 + $0x2f0] sm:$0xff] }
  0xe3   : > { %873 = vst [vmem:[%s1922_s20 + $0x5a8] sm:$0xff] %v617_v26  ;;  %874 = vst [vmem:[%s1922_s20 + $0x5b0] sm:$0xff] %v618_v27  ;;  %v622_v31 = vld [vmem:[%s1912_s9 + $0x2f8] sm:$0xff]  ;;  %v623_v32 = vld [vmem:[%s1912_s9 + $0x300] sm:$0xff] }
  0xe4   : > { %875 = vst [vmem:[%s1922_s20 + $0x5c8] sm:$0xff] %v619_v28  ;;  %876 = vst [vmem:[%s1922_s20 + $0x5d0] sm:$0xff] %v620_v29  ;;  %v624_v33 = vld [vmem:[%s1912_s9 + $0x308] sm:$0xff]  ;;  %v625_v34 = vld [vmem:[%s1912_s9 + $0x310] sm:$0xff] }
  0xe5   : > { %877 = vst [vmem:[%s1922_s20 + $0x5e8] sm:$0xff] %v621_v30  ;;  %878 = vst [vmem:[%s1922_s20 + $0x5f0] sm:$0xff] %v622_v31  ;;  %v626_v35 = vld [vmem:[%s1912_s9 + $0x318] sm:$0xff]  ;;  %v627_v36 = vld [vmem:[%s1912_s9 + $0x320] sm:$0xff] }
  0xe6   : > { %879 = vst [vmem:[%s1922_s20 + $0x608] sm:$0xff] %v623_v32  ;;  %880 = vst [vmem:[%s1922_s20 + $0x610] sm:$0xff] %v624_v33  ;;  %v628_v37 = vld [vmem:[%s1912_s9 + $0x328] sm:$0xff]  ;;  %v629_v38 = vld [vmem:[%s1912_s9 + $0x330] sm:$0xff] }
  0xe7   : > { %881 = vst [vmem:[%s1922_s20 + $0x628] sm:$0xff] %v625_v34  ;;  %882 = vst [vmem:[%s1922_s20 + $0x630] sm:$0xff] %v626_v35  ;;  %v630_v39 = vld [vmem:[%s1912_s9 + $0x338] sm:$0xff]  ;;  %v631_v40 = vld [vmem:[%s1912_s9 + $0x340] sm:$0xff] }
  0xe8   : > { %883 = vst [vmem:[%s1922_s20 + $0x648] sm:$0xff] %v627_v36  ;;  %884 = vst [vmem:[%s1922_s20 + $0x650] sm:$0xff] %v628_v37  ;;  %v632_v41 = vld [vmem:[%s1912_s9 + $0x348] sm:$0xff]  ;;  %v633_v42 = vld [vmem:[%s1912_s9 + $0x350] sm:$0xff] }
  0xe9   : > { %885 = vst [vmem:[%s1922_s20 + $0x668] sm:$0xff] %v629_v38  ;;  %886 = vst [vmem:[%s1922_s20 + $0x670] sm:$0xff] %v630_v39  ;;  %v634_v43 = vld [vmem:[%s1912_s9 + $0x358] sm:$0xff]  ;;  %v635_v44 = vld [vmem:[%s1912_s9 + $0x360] sm:$0xff] }
  0xea   : > { %887 = vst [vmem:[%s1922_s20 + $0x688] sm:$0xff] %v631_v40  ;;  %888 = vst [vmem:[%s1922_s20 + $0x690] sm:$0xff] %v632_v41  ;;  %v636_v45 = vld [vmem:[%s1912_s9 + $0x368] sm:$0xff]  ;;  %v637_v46 = vld [vmem:[%s1912_s9 + $0x370] sm:$0xff] }
  0xeb   : > { %889 = vst [vmem:[%s1922_s20 + $0x6a8] sm:$0xff] %v633_v42  ;;  %890 = vst [vmem:[%s1922_s20 + $0x6b0] sm:$0xff] %v634_v43  ;;  %v638_v47 = vld [vmem:[%s1912_s9 + $0x378] sm:$0xff]  ;;  %v639_v48 = vld [vmem:[%s1912_s9 + $0x380] sm:$0xff] }
  0xec   : > { %891 = vst [vmem:[%s1922_s20 + $0x6c8] sm:$0xff] %v635_v44  ;;  %892 = vst [vmem:[%s1922_s20 + $0x6d0] sm:$0xff] %v636_v45  ;;  %v640_v49 = vld [vmem:[%s1912_s9 + $0x388] sm:$0xff]  ;;  %v641_v50 = vld [vmem:[%s1912_s9 + $0x390] sm:$0xff] }
  0xed   : > { %893 = vst [vmem:[%s1922_s20 + $0x6e8] sm:$0xff] %v637_v46  ;;  %894 = vst [vmem:[%s1922_s20 + $0x6f0] sm:$0xff] %v638_v47  ;;  %v642_v51 = vld [vmem:[%s1912_s9 + $0x398] sm:$0xff]  ;;  %v643_v52 = vld [vmem:[%s1912_s9 + $0x3a0] sm:$0xff] }
  0xee   : > { %895 = vst [vmem:[%s1922_s20 + $0x708] sm:$0xff] %v639_v48  ;;  %896 = vst [vmem:[%s1922_s20 + $0x710] sm:$0xff] %v640_v49  ;;  %v644_v53 = vld [vmem:[%s1912_s9 + $0x3a8] sm:$0xff]  ;;  %v645_v54 = vld [vmem:[%s1912_s9 + $0x3b0] sm:$0xff] }
  0xef   : > { %897 = vst [vmem:[%s1922_s20 + $0x728] sm:$0xff] %v641_v50  ;;  %898 = vst [vmem:[%s1922_s20 + $0x730] sm:$0xff] %v642_v51  ;;  %v646_v55 = vld [vmem:[%s1912_s9 + $0x3b8] sm:$0xff]  ;;  %v647_v56 = vld [vmem:[%s1912_s9 + $0x3c0] sm:$0xff] }
  0xf0   : > { %899 = vst [vmem:[%s1922_s20 + $0x748] sm:$0xff] %v643_v52  ;;  %900 = vst [vmem:[%s1922_s20 + $0x750] sm:$0xff] %v644_v53  ;;  %v648_v57 = vld [vmem:[%s1912_s9 + $0x3c8] sm:$0xff]  ;;  %v649_v58 = vld [vmem:[%s1912_s9 + $0x3d0] sm:$0xff] }
  0xf1   : > { %901 = vst [vmem:[%s1922_s20 + $0x768] sm:$0xff] %v645_v54  ;;  %902 = vst [vmem:[%s1922_s20 + $0x770] sm:$0xff] %v646_v55  ;;  %v650_v59 = vld [vmem:[%s1912_s9 + $0x3d8] sm:$0xff]  ;;  %v651_v60 = vld [vmem:[%s1912_s9 + $0x3e0] sm:$0xff] }
  0xf2   : > { %903 = vst [vmem:[%s1922_s20 + $0x788] sm:$0xff] %v647_v56  ;;  %904 = vst [vmem:[%s1922_s20 + $0x790] sm:$0xff] %v648_v57  ;;  %v652_v61 = vld [vmem:[%s1912_s9 + $0x3e8] sm:$0xff]  ;;  %v653_v62 = vld [vmem:[%s1912_s9 + $0x3f0] sm:$0xff] }
  0xf3   : > { %905 = vst [vmem:[%s1922_s20 + $0x7a8] sm:$0xff] %v649_v58  ;;  %906 = vst [vmem:[%s1922_s20 + $0x7b0] sm:$0xff] %v650_v59  ;;  %v654_v63 = vld [vmem:[%s1912_s9 + $0x3f8] sm:$0xff]  ;;  %v655_v0 = vld [vmem:[%s1912_s9 + $0x400] sm:$0xff] }
  0xf4   : > { %907 = vst [vmem:[%s1922_s20 + $0x7c8] sm:$0xff] %v651_v60  ;;  %908 = vst [vmem:[%s1922_s20 + $0x7d0] sm:$0xff] %v652_v61  ;;  %v656_v1 = vld [vmem:[%s1912_s9 + $0x408] sm:$0xff]  ;;  %v657_v2 = vld [vmem:[%s1912_s9 + $0x410] sm:$0xff] }
  0xf5   : > { %909 = vst [vmem:[%s1922_s20 + $0x7e8] sm:$0xff] %v653_v62  ;;  %910 = vst [vmem:[%s1922_s20 + $0x7f0] sm:$0xff] %v654_v63  ;;  %v658_v3 = vld [vmem:[%s1912_s9 + $0x418] sm:$0xff]  ;;  %v659_v4 = vld [vmem:[%s1912_s9 + $0x420] sm:$0xff] }
  0xf6   : > { %911 = vst [vmem:[%s1922_s20 + $0x808] sm:$0xff] %v655_v0  ;;  %912 = vst [vmem:[%s1922_s20 + $0x810] sm:$0xff] %v656_v1  ;;  %v660_v5 = vld [vmem:[%s1912_s9 + $0x428] sm:$0xff]  ;;  %v661_v6 = vld [vmem:[%s1912_s9 + $0x430] sm:$0xff] }
  0xf7   : > { %913 = vst [vmem:[%s1922_s20 + $0x828] sm:$0xff] %v657_v2  ;;  %914 = vst [vmem:[%s1922_s20 + $0x830] sm:$0xff] %v658_v3  ;;  %v662_v7 = vld [vmem:[%s1912_s9 + $0x438] sm:$0xff]  ;;  %v663_v8 = vld [vmem:[%s1912_s9 + $0x440] sm:$0xff] }
  0xf8   : > { %915 = vst [vmem:[%s1922_s20 + $0x848] sm:$0xff] %v659_v4  ;;  %916 = vst [vmem:[%s1922_s20 + $0x850] sm:$0xff] %v660_v5  ;;  %v664_v9 = vld [vmem:[%s1912_s9 + $0x448] sm:$0xff]  ;;  %v665_v10 = vld [vmem:[%s1912_s9 + $0x450] sm:$0xff] }
  0xf9   : > { %917 = vst [vmem:[%s1922_s20 + $0x868] sm:$0xff] %v661_v6  ;;  %918 = vst [vmem:[%s1922_s20 + $0x870] sm:$0xff] %v662_v7  ;;  %v666_v11 = vld [vmem:[%s1912_s9 + $0x458] sm:$0xff]  ;;  %v667_v12 = vld [vmem:[%s1912_s9 + $0x460] sm:$0xff] }
  0xfa   : > { %919 = vst [vmem:[%s1922_s20 + $0x888] sm:$0xff] %v663_v8  ;;  %920 = vst [vmem:[%s1922_s20 + $0x890] sm:$0xff] %v664_v9  ;;  %v668_v13 = vld [vmem:[%s1912_s9 + $0x468] sm:$0xff]  ;;  %v669_v14 = vld [vmem:[%s1912_s9 + $0x470] sm:$0xff] }
  0xfb   : > { %921 = vst [vmem:[%s1922_s20 + $0x8a8] sm:$0xff] %v665_v10  ;;  %922 = vst [vmem:[%s1922_s20 + $0x8b0] sm:$0xff] %v666_v11  ;;  %v670_v15 = vld [vmem:[%s1912_s9 + $0x478] sm:$0xff]  ;;  %v671_v16 = vld [vmem:[%s1912_s9 + $0x480] sm:$0xff] }
  0xfc   : > { %923 = vst [vmem:[%s1922_s20 + $0x8c8] sm:$0xff] %v667_v12  ;;  %924 = vst [vmem:[%s1922_s20 + $0x8d0] sm:$0xff] %v668_v13  ;;  %v672_v17 = vld [vmem:[%s1912_s9 + $0x488] sm:$0xff]  ;;  %v673_v18 = vld [vmem:[%s1912_s9 + $0x490] sm:$0xff] }
  0xfd   : > { %925 = vst [vmem:[%s1922_s20 + $0x8e8] sm:$0xff] %v669_v14  ;;  %926 = vst [vmem:[%s1922_s20 + $0x8f0] sm:$0xff] %v670_v15  ;;  %v674_v19 = vld [vmem:[%s1912_s9 + $0x498] sm:$0xff]  ;;  %v675_v20 = vld [vmem:[%s1912_s9 + $0x4a0] sm:$0xff] }
  0xfe   : > { %927 = vst [vmem:[%s1922_s20 + $0x908] sm:$0xff] %v671_v16  ;;  %928 = vst [vmem:[%s1922_s20 + $0x910] sm:$0xff] %v672_v17  ;;  %v676_v21 = vld [vmem:[%s1912_s9 + $0x4a8] sm:$0xff]  ;;  %v677_v22 = vld [vmem:[%s1912_s9 + $0x4b0] sm:$0xff] }
  0xff   : > { %929 = vst [vmem:[%s1922_s20 + $0x928] sm:$0xff] %v673_v18  ;;  %930 = vst [vmem:[%s1922_s20 + $0x930] sm:$0xff] %v674_v19  ;;  %v678_v23 = vld [vmem:[%s1912_s9 + $0x4b8] sm:$0xff]  ;;  %v679_v24 = vld [vmem:[%s1912_s9 + $0x4c0] sm:$0xff] }
 0x100   : > { %931 = vst [vmem:[%s1922_s20 + $0x948] sm:$0xff] %v675_v20  ;;  %932 = vst [vmem:[%s1922_s20 + $0x950] sm:$0xff] %v676_v21  ;;  %v680_v25 = vld [vmem:[%s1912_s9 + $0x4c8] sm:$0xff]  ;;  %v681_v26 = vld [vmem:[%s1912_s9 + $0x4d0] sm:$0xff] }
 0x101   : > { %933 = vst [vmem:[%s1922_s20 + $0x968] sm:$0xff] %v677_v22  ;;  %934 = vst [vmem:[%s1922_s20 + $0x970] sm:$0xff] %v678_v23  ;;  %v682_v27 = vld [vmem:[%s1912_s9 + $0x4d8] sm:$0xff]  ;;  %v683_v28 = vld [vmem:[%s1912_s9 + $0x4e0] sm:$0xff] }
 0x102   : > { %935 = vst [vmem:[%s1922_s20 + $0x988] sm:$0xff] %v679_v24  ;;  %936 = vst [vmem:[%s1922_s20 + $0x990] sm:$0xff] %v680_v25  ;;  %v684_v29 = vld [vmem:[%s1912_s9 + $0x4e8] sm:$0xff]  ;;  %v685_v30 = vld [vmem:[%s1912_s9 + $0x4f0] sm:$0xff] }
 0x103   : > { %937 = vst [vmem:[%s1922_s20 + $0x9a8] sm:$0xff] %v681_v26  ;;  %938 = vst [vmem:[%s1922_s20 + $0x9b0] sm:$0xff] %v682_v27  ;;  %v686_v31 = vld [vmem:[%s1912_s9 + $0x4f8] sm:$0xff]  ;;  %v687_v32 = vld [vmem:[%s1912_s9 + $0x500] sm:$0xff] }
 0x104   : > { %939 = vst [vmem:[%s1922_s20 + $0x9c8] sm:$0xff] %v683_v28  ;;  %940 = vst [vmem:[%s1922_s20 + $0x9d0] sm:$0xff] %v684_v29  ;;  %v688_v33 = vld [vmem:[%s1912_s9 + $0x508] sm:$0xff]  ;;  %v689_v34 = vld [vmem:[%s1912_s9 + $0x510] sm:$0xff] }
 0x105   : > { %941 = vst [vmem:[%s1922_s20 + $0x9e8] sm:$0xff] %v685_v30  ;;  %942 = vst [vmem:[%s1922_s20 + $0x9f0] sm:$0xff] %v686_v31  ;;  %v690_v35 = vld [vmem:[%s1912_s9 + $0x518] sm:$0xff]  ;;  %v691_v36 = vld [vmem:[%s1912_s9 + $0x520] sm:$0xff] }
 0x106   : > { %943 = vst [vmem:[%s1922_s20 + $0xa08] sm:$0xff] %v687_v32  ;;  %944 = vst [vmem:[%s1922_s20 + $0xa10] sm:$0xff] %v688_v33  ;;  %v692_v37 = vld [vmem:[%s1912_s9 + $0x528] sm:$0xff]  ;;  %v693_v38 = vld [vmem:[%s1912_s9 + $0x530] sm:$0xff] }
 0x107   : > { %945 = vst [vmem:[%s1922_s20 + $0xa28] sm:$0xff] %v689_v34  ;;  %946 = vst [vmem:[%s1922_s20 + $0xa30] sm:$0xff] %v690_v35  ;;  %v694_v39 = vld [vmem:[%s1912_s9 + $0x538] sm:$0xff]  ;;  %v695_v40 = vld [vmem:[%s1912_s9 + $0x540] sm:$0xff] }
 0x108   : > { %947 = vst [vmem:[%s1922_s20 + $0xa48] sm:$0xff] %v691_v36  ;;  %948 = vst [vmem:[%s1922_s20 + $0xa50] sm:$0xff] %v692_v37  ;;  %v696_v41 = vld [vmem:[%s1912_s9 + $0x548] sm:$0xff]  ;;  %v697_v42 = vld [vmem:[%s1912_s9 + $0x550] sm:$0xff] }
 0x109   : > { %949 = vst [vmem:[%s1922_s20 + $0xa68] sm:$0xff] %v693_v38  ;;  %950 = vst [vmem:[%s1922_s20 + $0xa70] sm:$0xff] %v694_v39  ;;  %v698_v43 = vld [vmem:[%s1912_s9 + $0x558] sm:$0xff]  ;;  %v699_v44 = vld [vmem:[%s1912_s9 + $0x560] sm:$0xff] }
 0x10a   : > { %951 = vst [vmem:[%s1922_s20 + $0xa88] sm:$0xff] %v695_v40  ;;  %952 = vst [vmem:[%s1922_s20 + $0xa90] sm:$0xff] %v696_v41  ;;  %v700_v45 = vld [vmem:[%s1912_s9 + $0x568] sm:$0xff]  ;;  %v701_v46 = vld [vmem:[%s1912_s9 + $0x570] sm:$0xff] }
 0x10b   : > { %953 = vst [vmem:[%s1922_s20 + $0xaa8] sm:$0xff] %v697_v42  ;;  %954 = vst [vmem:[%s1922_s20 + $0xab0] sm:$0xff] %v698_v43  ;;  %v702_v47 = vld [vmem:[%s1912_s9 + $0x578] sm:$0xff]  ;;  %v703_v48 = vld [vmem:[%s1912_s9 + $0x580] sm:$0xff] }
 0x10c   : > { %955 = vst [vmem:[%s1922_s20 + $0xac8] sm:$0xff] %v699_v44  ;;  %956 = vst [vmem:[%s1922_s20 + $0xad0] sm:$0xff] %v700_v45  ;;  %v704_v49 = vld [vmem:[%s1912_s9 + $0x588] sm:$0xff]  ;;  %v705_v50 = vld [vmem:[%s1912_s9 + $0x590] sm:$0xff] }
 0x10d   : > { %957 = vst [vmem:[%s1922_s20 + $0xae8] sm:$0xff] %v701_v46  ;;  %958 = vst [vmem:[%s1922_s20 + $0xaf0] sm:$0xff] %v702_v47  ;;  %v706_v51 = vld [vmem:[%s1912_s9 + $0x598] sm:$0xff]  ;;  %v707_v52 = vld [vmem:[%s1912_s9 + $0x5a0] sm:$0xff] }
 0x10e   : > { %959 = vst [vmem:[%s1922_s20 + $0xb08] sm:$0xff] %v703_v48  ;;  %960 = vst [vmem:[%s1922_s20 + $0xb10] sm:$0xff] %v704_v49  ;;  %v708_v53 = vld [vmem:[%s1912_s9 + $0x5a8] sm:$0xff]  ;;  %v709_v54 = vld [vmem:[%s1912_s9 + $0x5b0] sm:$0xff] }
 0x10f   : > { %961 = vst [vmem:[%s1922_s20 + $0xb28] sm:$0xff] %v705_v50  ;;  %962 = vst [vmem:[%s1922_s20 + $0xb30] sm:$0xff] %v706_v51  ;;  %v710_v55 = vld [vmem:[%s1912_s9 + $0x5b8] sm:$0xff]  ;;  %v711_v56 = vld [vmem:[%s1912_s9 + $0x5c0] sm:$0xff] }
 0x110   : > { %963 = vst [vmem:[%s1922_s20 + $0xb48] sm:$0xff] %v707_v52  ;;  %964 = vst [vmem:[%s1922_s20 + $0xb50] sm:$0xff] %v708_v53  ;;  %v712_v57 = vld [vmem:[%s1912_s9 + $0x5c8] sm:$0xff]  ;;  %v713_v58 = vld [vmem:[%s1912_s9 + $0x5d0] sm:$0xff] }
 0x111   : > { %965 = vst [vmem:[%s1922_s20 + $0xb68] sm:$0xff] %v709_v54  ;;  %966 = vst [vmem:[%s1922_s20 + $0xb70] sm:$0xff] %v710_v55  ;;  %v714_v59 = vld [vmem:[%s1912_s9 + $0x5d8] sm:$0xff]  ;;  %v715_v60 = vld [vmem:[%s1912_s9 + $0x5e0] sm:$0xff] }
 0x112   : > { %967 = vst [vmem:[%s1922_s20 + $0xb88] sm:$0xff] %v711_v56  ;;  %968 = vst [vmem:[%s1922_s20 + $0xb90] sm:$0xff] %v712_v57  ;;  %v716_v61 = vld [vmem:[%s1912_s9 + $0x5e8] sm:$0xff]  ;;  %v717_v62 = vld [vmem:[%s1912_s9 + $0x5f0] sm:$0xff] }
 0x113   : > { %969 = vst [vmem:[%s1922_s20 + $0xba8] sm:$0xff] %v713_v58  ;;  %970 = vst [vmem:[%s1922_s20 + $0xbb0] sm:$0xff] %v714_v59  ;;  %v718_v63 = vld [vmem:[%s1912_s9 + $0x5f8] sm:$0xff]  ;;  %v719_v0 = vld [vmem:[%s1912_s9 + $0x600] sm:$0xff] }
 0x114   : > { %971 = vst [vmem:[%s1922_s20 + $0xbc8] sm:$0xff] %v715_v60  ;;  %972 = vst [vmem:[%s1922_s20 + $0xbd0] sm:$0xff] %v716_v61  ;;  %v720_v1 = vld [vmem:[%s1912_s9 + $0x608] sm:$0xff]  ;;  %v721_v2 = vld [vmem:[%s1912_s9 + $0x610] sm:$0xff] }
 0x115   : > { %973 = vst [vmem:[%s1922_s20 + $0xbe8] sm:$0xff] %v717_v62  ;;  %974 = vst [vmem:[%s1922_s20 + $0xbf0] sm:$0xff] %v718_v63  ;;  %v722_v3 = vld [vmem:[%s1912_s9 + $0x618] sm:$0xff]  ;;  %v723_v4 = vld [vmem:[%s1912_s9 + $0x620] sm:$0xff] }
 0x116   : > { %975 = vst [vmem:[%s1922_s20 + $0xc08] sm:$0xff] %v719_v0  ;;  %976 = vst [vmem:[%s1922_s20 + $0xc10] sm:$0xff] %v720_v1  ;;  %v724_v5 = vld [vmem:[%s1912_s9 + $0x628] sm:$0xff]  ;;  %v725_v6 = vld [vmem:[%s1912_s9 + $0x630] sm:$0xff] }
 0x117   : > { %977 = vst [vmem:[%s1922_s20 + $0xc28] sm:$0xff] %v721_v2  ;;  %978 = vst [vmem:[%s1922_s20 + $0xc30] sm:$0xff] %v722_v3  ;;  %v726_v7 = vld [vmem:[%s1912_s9 + $0x638] sm:$0xff]  ;;  %v727_v8 = vld [vmem:[%s1912_s9 + $0x640] sm:$0xff] }
 0x118   : > { %979 = vst [vmem:[%s1922_s20 + $0xc48] sm:$0xff] %v723_v4  ;;  %980 = vst [vmem:[%s1922_s20 + $0xc50] sm:$0xff] %v724_v5  ;;  %v728_v9 = vld [vmem:[%s1912_s9 + $0x648] sm:$0xff]  ;;  %v729_v10 = vld [vmem:[%s1912_s9 + $0x650] sm:$0xff] }
 0x119   : > { %981 = vst [vmem:[%s1922_s20 + $0xc68] sm:$0xff] %v725_v6  ;;  %982 = vst [vmem:[%s1922_s20 + $0xc70] sm:$0xff] %v726_v7  ;;  %v730_v11 = vld [vmem:[%s1912_s9 + $0x658] sm:$0xff]  ;;  %v731_v12 = vld [vmem:[%s1912_s9 + $0x660] sm:$0xff] }
 0x11a   : > { %983 = vst [vmem:[%s1922_s20 + $0xc88] sm:$0xff] %v727_v8  ;;  %984 = vst [vmem:[%s1922_s20 + $0xc90] sm:$0xff] %v728_v9  ;;  %v732_v13 = vld [vmem:[%s1912_s9 + $0x668] sm:$0xff]  ;;  %v733_v14 = vld [vmem:[%s1912_s9 + $0x670] sm:$0xff] }
 0x11b   : > { %985 = vst [vmem:[%s1922_s20 + $0xca8] sm:$0xff] %v729_v10  ;;  %986 = vst [vmem:[%s1922_s20 + $0xcb0] sm:$0xff] %v730_v11  ;;  %v734_v15 = vld [vmem:[%s1912_s9 + $0x678] sm:$0xff]  ;;  %v735_v16 = vld [vmem:[%s1912_s9 + $0x680] sm:$0xff] }
 0x11c   : > { %987 = vst [vmem:[%s1922_s20 + $0xcc8] sm:$0xff] %v731_v12  ;;  %988 = vst [vmem:[%s1922_s20 + $0xcd0] sm:$0xff] %v732_v13  ;;  %v736_v17 = vld [vmem:[%s1912_s9 + $0x688] sm:$0xff]  ;;  %v737_v18 = vld [vmem:[%s1912_s9 + $0x690] sm:$0xff] }
 0x11d   : > { %989 = vst [vmem:[%s1922_s20 + $0xce8] sm:$0xff] %v733_v14  ;;  %990 = vst [vmem:[%s1922_s20 + $0xcf0] sm:$0xff] %v734_v15  ;;  %v738_v19 = vld [vmem:[%s1912_s9 + $0x698] sm:$0xff]  ;;  %v739_v20 = vld [vmem:[%s1912_s9 + $0x6a0] sm:$0xff] }
 0x11e   : > { %991 = vst [vmem:[%s1922_s20 + $0xd08] sm:$0xff] %v735_v16  ;;  %992 = vst [vmem:[%s1922_s20 + $0xd10] sm:$0xff] %v736_v17  ;;  %v740_v21 = vld [vmem:[%s1912_s9 + $0x6a8] sm:$0xff]  ;;  %v741_v22 = vld [vmem:[%s1912_s9 + $0x6b0] sm:$0xff] }
 0x11f   : > { %993 = vst [vmem:[%s1922_s20 + $0xd28] sm:$0xff] %v737_v18  ;;  %994 = vst [vmem:[%s1922_s20 + $0xd30] sm:$0xff] %v738_v19  ;;  %v742_v23 = vld [vmem:[%s1912_s9 + $0x6b8] sm:$0xff]  ;;  %v743_v24 = vld [vmem:[%s1912_s9 + $0x6c0] sm:$0xff] }
 0x120   : > { %995 = vst [vmem:[%s1922_s20 + $0xd48] sm:$0xff] %v739_v20  ;;  %996 = vst [vmem:[%s1922_s20 + $0xd50] sm:$0xff] %v740_v21  ;;  %v744_v25 = vld [vmem:[%s1912_s9 + $0x6c8] sm:$0xff]  ;;  %v745_v26 = vld [vmem:[%s1912_s9 + $0x6d0] sm:$0xff] }
 0x121   : > { %997 = vst [vmem:[%s1922_s20 + $0xd68] sm:$0xff] %v741_v22  ;;  %998 = vst [vmem:[%s1922_s20 + $0xd70] sm:$0xff] %v742_v23  ;;  %v746_v27 = vld [vmem:[%s1912_s9 + $0x6d8] sm:$0xff]  ;;  %v747_v28 = vld [vmem:[%s1912_s9 + $0x6e0] sm:$0xff] }
 0x122   : > { %999 = vst [vmem:[%s1922_s20 + $0xd88] sm:$0xff] %v743_v24  ;;  %1000 = vst [vmem:[%s1922_s20 + $0xd90] sm:$0xff] %v744_v25  ;;  %v748_v29 = vld [vmem:[%s1912_s9 + $0x6e8] sm:$0xff]  ;;  %v749_v30 = vld [vmem:[%s1912_s9 + $0x6f0] sm:$0xff] }
 0x123   : > { %1001 = vst [vmem:[%s1922_s20 + $0xda8] sm:$0xff] %v745_v26  ;;  %1002 = vst [vmem:[%s1922_s20 + $0xdb0] sm:$0xff] %v746_v27  ;;  %v750_v31 = vld [vmem:[%s1912_s9 + $0x6f8] sm:$0xff]  ;;  %v751_v32 = vld [vmem:[%s1912_s9 + $0x700] sm:$0xff] }
 0x124   : > { %1003 = vst [vmem:[%s1922_s20 + $0xdc8] sm:$0xff] %v747_v28  ;;  %1004 = vst [vmem:[%s1922_s20 + $0xdd0] sm:$0xff] %v748_v29  ;;  %v752_v33 = vld [vmem:[%s1912_s9 + $0x708] sm:$0xff]  ;;  %v753_v34 = vld [vmem:[%s1912_s9 + $0x710] sm:$0xff] }
 0x125   : > { %1005 = vst [vmem:[%s1922_s20 + $0xde8] sm:$0xff] %v749_v30  ;;  %1006 = vst [vmem:[%s1922_s20 + $0xdf0] sm:$0xff] %v750_v31  ;;  %v754_v35 = vld [vmem:[%s1912_s9 + $0x718] sm:$0xff]  ;;  %v755_v36 = vld [vmem:[%s1912_s9 + $0x720] sm:$0xff] }
 0x126   : > { %1007 = vst [vmem:[%s1922_s20 + $0xe08] sm:$0xff] %v751_v32  ;;  %1008 = vst [vmem:[%s1922_s20 + $0xe10] sm:$0xff] %v752_v33  ;;  %v756_v37 = vld [vmem:[%s1912_s9 + $0x728] sm:$0xff]  ;;  %v757_v38 = vld [vmem:[%s1912_s9 + $0x730] sm:$0xff] }
 0x127   : > { %1009 = vst [vmem:[%s1922_s20 + $0xe28] sm:$0xff] %v753_v34  ;;  %1010 = vst [vmem:[%s1922_s20 + $0xe30] sm:$0xff] %v754_v35  ;;  %v758_v39 = vld [vmem:[%s1912_s9 + $0x738] sm:$0xff]  ;;  %v759_v40 = vld [vmem:[%s1912_s9 + $0x740] sm:$0xff] }
 0x128   : > { %1011 = vst [vmem:[%s1922_s20 + $0xe48] sm:$0xff] %v755_v36  ;;  %1012 = vst [vmem:[%s1922_s20 + $0xe50] sm:$0xff] %v756_v37  ;;  %v760_v41 = vld [vmem:[%s1912_s9 + $0x748] sm:$0xff]  ;;  %v761_v42 = vld [vmem:[%s1912_s9 + $0x750] sm:$0xff] }
 0x129   : > { %1013 = vst [vmem:[%s1922_s20 + $0xe68] sm:$0xff] %v757_v38  ;;  %1014 = vst [vmem:[%s1922_s20 + $0xe70] sm:$0xff] %v758_v39  ;;  %v762_v43 = vld [vmem:[%s1912_s9 + $0x758] sm:$0xff]  ;;  %v763_v44 = vld [vmem:[%s1912_s9 + $0x760] sm:$0xff] }
 0x12a   : > { %1015 = vst [vmem:[%s1922_s20 + $0xe88] sm:$0xff] %v759_v40  ;;  %1016 = vst [vmem:[%s1922_s20 + $0xe90] sm:$0xff] %v760_v41  ;;  %v764_v45 = vld [vmem:[%s1912_s9 + $0x768] sm:$0xff]  ;;  %v765_v46 = vld [vmem:[%s1912_s9 + $0x770] sm:$0xff] }
 0x12b   : > { %1017 = vst [vmem:[%s1922_s20 + $0xea8] sm:$0xff] %v761_v42  ;;  %1018 = vst [vmem:[%s1922_s20 + $0xeb0] sm:$0xff] %v762_v43  ;;  %v766_v47 = vld [vmem:[%s1912_s9 + $0x778] sm:$0xff]  ;;  %v767_v48 = vld [vmem:[%s1912_s9 + $0x780] sm:$0xff] }
 0x12c   : > { %1019 = vst [vmem:[%s1922_s20 + $0xec8] sm:$0xff] %v763_v44  ;;  %1020 = vst [vmem:[%s1922_s20 + $0xed0] sm:$0xff] %v764_v45  ;;  %v768_v49 = vld [vmem:[%s1912_s9 + $0x788] sm:$0xff]  ;;  %v769_v50 = vld [vmem:[%s1912_s9 + $0x790] sm:$0xff] }
 0x12d   : > { %1021 = vst [vmem:[%s1922_s20 + $0xee8] sm:$0xff] %v765_v46  ;;  %1022 = vst [vmem:[%s1922_s20 + $0xef0] sm:$0xff] %v766_v47  ;;  %v770_v51 = vld [vmem:[%s1912_s9 + $0x798] sm:$0xff]  ;;  %v771_v52 = vld [vmem:[%s1912_s9 + $0x7a0] sm:$0xff] }
 0x12e   : > { %1023 = vst [vmem:[%s1922_s20 + $0xf08] sm:$0xff] %v767_v48  ;;  %1024 = vst [vmem:[%s1922_s20 + $0xf10] sm:$0xff] %v768_v49  ;;  %v772_v53 = vld [vmem:[%s1912_s9 + $0x7a8] sm:$0xff]  ;;  %v773_v54 = vld [vmem:[%s1912_s9 + $0x7b0] sm:$0xff] }
 0x12f   : > { %1025 = vst [vmem:[%s1922_s20 + $0xf28] sm:$0xff] %v769_v50  ;;  %1026 = vst [vmem:[%s1922_s20 + $0xf30] sm:$0xff] %v770_v51  ;;  %v774_v55 = vld [vmem:[%s1912_s9 + $0x7b8] sm:$0xff]  ;;  %v775_v56 = vld [vmem:[%s1912_s9 + $0x7c0] sm:$0xff] }
 0x130   : > { %1027 = vst [vmem:[%s1922_s20 + $0xf48] sm:$0xff] %v771_v52  ;;  %1028 = vst [vmem:[%s1922_s20 + $0xf50] sm:$0xff] %v772_v53  ;;  %v776_v57 = vld [vmem:[%s1912_s9 + $0x7c8] sm:$0xff]  ;;  %v777_v58 = vld [vmem:[%s1912_s9 + $0x7d0] sm:$0xff] }
 0x131   : > { %1029 = vst [vmem:[%s1922_s20 + $0xf68] sm:$0xff] %v773_v54  ;;  %1030 = vst [vmem:[%s1922_s20 + $0xf70] sm:$0xff] %v774_v55  ;;  %v778_v59 = vld [vmem:[%s1912_s9 + $0x7d8] sm:$0xff]  ;;  %v779_v60 = vld [vmem:[%s1912_s9 + $0x7e0] sm:$0xff] }
 0x132   : > { %1031 = vst [vmem:[%s1922_s20 + $0xf88] sm:$0xff] %v775_v56  ;;  %1032 = vst [vmem:[%s1922_s20 + $0xf90] sm:$0xff] %v776_v57  ;;  %v780_v61 = vld [vmem:[%s1912_s9 + $0x7e8] sm:$0xff]  ;;  %v781_v62 = vld [vmem:[%s1912_s9 + $0x7f0] sm:$0xff] }
 0x133   : > { %1033 = vst [vmem:[%s1922_s20 + $0xfa8] sm:$0xff] %v777_v58  ;;  %1034 = vst [vmem:[%s1922_s20 + $0xfb0] sm:$0xff] %v778_v59  ;;  %v782_v63 = vld [vmem:[%s1912_s9 + $0x7f8] sm:$0xff]  ;;  %v1039_v0 = vld [vmem:[%s2691_s22] sm:$0xff] }
 0x134   : > { %1035 = vst [vmem:[%s1922_s20 + $0xfc8] sm:$0xff] %v779_v60  ;;  %1036 = vst [vmem:[%s1922_s20 + $0xfd0] sm:$0xff] %v780_v61  ;;  %v1040_v1 = vld [vmem:[%s2691_s22 + $0x8] sm:$0xff]  ;;  %v1041_v2 = vld [vmem:[%s2691_s22 + $0x10] sm:$0xff] }
 0x135   : > { %1037 = vst [vmem:[%s1922_s20 + $0xfe8] sm:$0xff] %v781_v62  ;;  %1038 = vst [vmem:[%s1922_s20 + $0xff0] sm:$0xff] %v782_v63  ;;  %v1042_v3 = vld [vmem:[%s2691_s22 + $0x18] sm:$0xff]  ;;  %v1043_v4 = vld [vmem:[%s2691_s22 + $0x20] sm:$0xff] }
 0x136   : > { %1167 = vst [vmem:[%s1922_s20 + $0x18] sm:$0xff] %v1039_v0  ;;  %1168 = vst [vmem:[%s1922_s20 + $0x38] sm:$0xff] %v1040_v1  ;;  %v1044_v5 = vld [vmem:[%s2691_s22 + $0x28] sm:$0xff]  ;;  %v1045_v6 = vld [vmem:[%s2691_s22 + $0x30] sm:$0xff] }
 0x137   : > { %1169 = vst [vmem:[%s1922_s20 + $0x58] sm:$0xff] %v1041_v2  ;;  %1170 = vst [vmem:[%s1922_s20 + $0x78] sm:$0xff] %v1042_v3  ;;  %v1046_v7 = vld [vmem:[%s2691_s22 + $0x38] sm:$0xff]  ;;  %v1047_v8 = vld [vmem:[%s2691_s22 + $0x40] sm:$0xff] }
 0x138   : > { %1171 = vst [vmem:[%s1922_s20 + $0x98] sm:$0xff] %v1043_v4  ;;  %1172 = vst [vmem:[%s1922_s20 + $0xb8] sm:$0xff] %v1044_v5  ;;  %v1048_v9 = vld [vmem:[%s2691_s22 + $0x48] sm:$0xff]  ;;  %v1049_v10 = vld [vmem:[%s2691_s22 + $0x50] sm:$0xff] }
 0x139   : > { %1173 = vst [vmem:[%s1922_s20 + $0xd8] sm:$0xff] %v1045_v6  ;;  %1174 = vst [vmem:[%s1922_s20 + $0xf8] sm:$0xff] %v1046_v7  ;;  %v1050_v11 = vld [vmem:[%s2691_s22 + $0x58] sm:$0xff]  ;;  %v1051_v12 = vld [vmem:[%s2691_s22 + $0x60] sm:$0xff] }
 0x13a   : > { %1175 = vst [vmem:[%s1922_s20 + $0x118] sm:$0xff] %v1047_v8  ;;  %1176 = vst [vmem:[%s1922_s20 + $0x138] sm:$0xff] %v1048_v9  ;;  %v1052_v13 = vld [vmem:[%s2691_s22 + $0x68] sm:$0xff]  ;;  %v1053_v14 = vld [vmem:[%s2691_s22 + $0x70] sm:$0xff] }
 0x13b   : > { %1177 = vst [vmem:[%s1922_s20 + $0x158] sm:$0xff] %v1049_v10  ;;  %1178 = vst [vmem:[%s1922_s20 + $0x178] sm:$0xff] %v1050_v11  ;;  %v1054_v15 = vld [vmem:[%s2691_s22 + $0x78] sm:$0xff]  ;;  %v1055_v16 = vld [vmem:[%s2691_s22 + $0x80] sm:$0xff] }
 0x13c   : > { %1179 = vst [vmem:[%s1922_s20 + $0x198] sm:$0xff] %v1051_v12  ;;  %1180 = vst [vmem:[%s1922_s20 + $0x1b8] sm:$0xff] %v1052_v13  ;;  %v1056_v17 = vld [vmem:[%s2691_s22 + $0x88] sm:$0xff]  ;;  %v1057_v18 = vld [vmem:[%s2691_s22 + $0x90] sm:$0xff] }
 0x13d   : > { %1181 = vst [vmem:[%s1922_s20 + $0x1d8] sm:$0xff] %v1053_v14  ;;  %1182 = vst [vmem:[%s1922_s20 + $0x1f8] sm:$0xff] %v1054_v15  ;;  %v1058_v19 = vld [vmem:[%s2691_s22 + $0x98] sm:$0xff]  ;;  %v1059_v20 = vld [vmem:[%s2691_s22 + $0xa0] sm:$0xff] }
 0x13e   : > { %1183 = vst [vmem:[%s1922_s20 + $0x218] sm:$0xff] %v1055_v16  ;;  %1184 = vst [vmem:[%s1922_s20 + $0x238] sm:$0xff] %v1056_v17  ;;  %v1060_v21 = vld [vmem:[%s2691_s22 + $0xa8] sm:$0xff]  ;;  %v1061_v22 = vld [vmem:[%s2691_s22 + $0xb0] sm:$0xff] }
 0x13f   : > { %1185 = vst [vmem:[%s1922_s20 + $0x258] sm:$0xff] %v1057_v18  ;;  %1186 = vst [vmem:[%s1922_s20 + $0x278] sm:$0xff] %v1058_v19  ;;  %v1062_v23 = vld [vmem:[%s2691_s22 + $0xb8] sm:$0xff]  ;;  %v1063_v24 = vld [vmem:[%s2691_s22 + $0xc0] sm:$0xff] }
 0x140   : > { %1187 = vst [vmem:[%s1922_s20 + $0x298] sm:$0xff] %v1059_v20  ;;  %1188 = vst [vmem:[%s1922_s20 + $0x2b8] sm:$0xff] %v1060_v21  ;;  %v1064_v25 = vld [vmem:[%s2691_s22 + $0xc8] sm:$0xff]  ;;  %v1065_v26 = vld [vmem:[%s2691_s22 + $0xd0] sm:$0xff] }
 0x141   : > { %1189 = vst [vmem:[%s1922_s20 + $0x2d8] sm:$0xff] %v1061_v22  ;;  %1190 = vst [vmem:[%s1922_s20 + $0x2f8] sm:$0xff] %v1062_v23  ;;  %v1066_v27 = vld [vmem:[%s2691_s22 + $0xd8] sm:$0xff]  ;;  %v1067_v28 = vld [vmem:[%s2691_s22 + $0xe0] sm:$0xff] }
 0x142   : > { %1191 = vst [vmem:[%s1922_s20 + $0x318] sm:$0xff] %v1063_v24  ;;  %1192 = vst [vmem:[%s1922_s20 + $0x338] sm:$0xff] %v1064_v25  ;;  %v1068_v29 = vld [vmem:[%s2691_s22 + $0xe8] sm:$0xff]  ;;  %v1069_v30 = vld [vmem:[%s2691_s22 + $0xf0] sm:$0xff] }
 0x143   : > { %1193 = vst [vmem:[%s1922_s20 + $0x358] sm:$0xff] %v1065_v26  ;;  %1194 = vst [vmem:[%s1922_s20 + $0x378] sm:$0xff] %v1066_v27  ;;  %v1070_v31 = vld [vmem:[%s2691_s22 + $0xf8] sm:$0xff]  ;;  %v1071_v32 = vld [vmem:[%s2691_s22 + $0x100] sm:$0xff] }
 0x144   : > { %1195 = vst [vmem:[%s1922_s20 + $0x398] sm:$0xff] %v1067_v28  ;;  %1196 = vst [vmem:[%s1922_s20 + $0x3b8] sm:$0xff] %v1068_v29  ;;  %v1072_v33 = vld [vmem:[%s2691_s22 + $0x108] sm:$0xff]  ;;  %v1073_v34 = vld [vmem:[%s2691_s22 + $0x110] sm:$0xff] }
 0x145   : > { %1197 = vst [vmem:[%s1922_s20 + $0x3d8] sm:$0xff] %v1069_v30  ;;  %1198 = vst [vmem:[%s1922_s20 + $0x3f8] sm:$0xff] %v1070_v31  ;;  %v1074_v35 = vld [vmem:[%s2691_s22 + $0x118] sm:$0xff]  ;;  %v1075_v36 = vld [vmem:[%s2691_s22 + $0x120] sm:$0xff] }
 0x146   : > { %1199 = vst [vmem:[%s1922_s20 + $0x418] sm:$0xff] %v1071_v32  ;;  %1200 = vst [vmem:[%s1922_s20 + $0x438] sm:$0xff] %v1072_v33  ;;  %v1076_v37 = vld [vmem:[%s2691_s22 + $0x128] sm:$0xff]  ;;  %v1077_v38 = vld [vmem:[%s2691_s22 + $0x130] sm:$0xff] }
 0x147   : > { %1201 = vst [vmem:[%s1922_s20 + $0x458] sm:$0xff] %v1073_v34  ;;  %1202 = vst [vmem:[%s1922_s20 + $0x478] sm:$0xff] %v1074_v35  ;;  %v1078_v39 = vld [vmem:[%s2691_s22 + $0x138] sm:$0xff]  ;;  %v1079_v40 = vld [vmem:[%s2691_s22 + $0x140] sm:$0xff] }
 0x148   : > { %1203 = vst [vmem:[%s1922_s20 + $0x498] sm:$0xff] %v1075_v36  ;;  %1204 = vst [vmem:[%s1922_s20 + $0x4b8] sm:$0xff] %v1076_v37  ;;  %v1080_v41 = vld [vmem:[%s2691_s22 + $0x148] sm:$0xff]  ;;  %v1081_v42 = vld [vmem:[%s2691_s22 + $0x150] sm:$0xff] }
 0x149   : > { %1205 = vst [vmem:[%s1922_s20 + $0x4d8] sm:$0xff] %v1077_v38  ;;  %1206 = vst [vmem:[%s1922_s20 + $0x4f8] sm:$0xff] %v1078_v39  ;;  %v1082_v43 = vld [vmem:[%s2691_s22 + $0x158] sm:$0xff]  ;;  %v1083_v44 = vld [vmem:[%s2691_s22 + $0x160] sm:$0xff] }
 0x14a   : > { %1207 = vst [vmem:[%s1922_s20 + $0x518] sm:$0xff] %v1079_v40  ;;  %1208 = vst [vmem:[%s1922_s20 + $0x538] sm:$0xff] %v1080_v41  ;;  %v1084_v45 = vld [vmem:[%s2691_s22 + $0x168] sm:$0xff]  ;;  %v1085_v46 = vld [vmem:[%s2691_s22 + $0x170] sm:$0xff] }
 0x14b   : > { %1209 = vst [vmem:[%s1922_s20 + $0x558] sm:$0xff] %v1081_v42  ;;  %1210 = vst [vmem:[%s1922_s20 + $0x578] sm:$0xff] %v1082_v43  ;;  %v1086_v47 = vld [vmem:[%s2691_s22 + $0x178] sm:$0xff]  ;;  %v1087_v48 = vld [vmem:[%s2691_s22 + $0x180] sm:$0xff] }
 0x14c   : > { %1211 = vst [vmem:[%s1922_s20 + $0x598] sm:$0xff] %v1083_v44  ;;  %1212 = vst [vmem:[%s1922_s20 + $0x5b8] sm:$0xff] %v1084_v45  ;;  %v1088_v49 = vld [vmem:[%s2691_s22 + $0x188] sm:$0xff]  ;;  %v1089_v50 = vld [vmem:[%s2691_s22 + $0x190] sm:$0xff] }
 0x14d   : > { %1213 = vst [vmem:[%s1922_s20 + $0x5d8] sm:$0xff] %v1085_v46  ;;  %1214 = vst [vmem:[%s1922_s20 + $0x5f8] sm:$0xff] %v1086_v47  ;;  %v1090_v51 = vld [vmem:[%s2691_s22 + $0x198] sm:$0xff]  ;;  %v1091_v52 = vld [vmem:[%s2691_s22 + $0x1a0] sm:$0xff] }
 0x14e   : > { %1215 = vst [vmem:[%s1922_s20 + $0x618] sm:$0xff] %v1087_v48  ;;  %1216 = vst [vmem:[%s1922_s20 + $0x638] sm:$0xff] %v1088_v49  ;;  %v1092_v53 = vld [vmem:[%s2691_s22 + $0x1a8] sm:$0xff]  ;;  %v1093_v54 = vld [vmem:[%s2691_s22 + $0x1b0] sm:$0xff] }
 0x14f   : > { %1217 = vst [vmem:[%s1922_s20 + $0x658] sm:$0xff] %v1089_v50  ;;  %1218 = vst [vmem:[%s1922_s20 + $0x678] sm:$0xff] %v1090_v51  ;;  %v1094_v55 = vld [vmem:[%s2691_s22 + $0x1b8] sm:$0xff]  ;;  %v1095_v56 = vld [vmem:[%s2691_s22 + $0x1c0] sm:$0xff] }
 0x150   : > { %1219 = vst [vmem:[%s1922_s20 + $0x698] sm:$0xff] %v1091_v52  ;;  %1220 = vst [vmem:[%s1922_s20 + $0x6b8] sm:$0xff] %v1092_v53  ;;  %v1096_v57 = vld [vmem:[%s2691_s22 + $0x1c8] sm:$0xff]  ;;  %v1097_v58 = vld [vmem:[%s2691_s22 + $0x1d0] sm:$0xff] }
 0x151   : > { %1221 = vst [vmem:[%s1922_s20 + $0x6d8] sm:$0xff] %v1093_v54  ;;  %1222 = vst [vmem:[%s1922_s20 + $0x6f8] sm:$0xff] %v1094_v55  ;;  %v1098_v59 = vld [vmem:[%s2691_s22 + $0x1d8] sm:$0xff]  ;;  %v1099_v60 = vld [vmem:[%s2691_s22 + $0x1e0] sm:$0xff] }
 0x152   : > { %1223 = vst [vmem:[%s1922_s20 + $0x718] sm:$0xff] %v1095_v56  ;;  %1224 = vst [vmem:[%s1922_s20 + $0x738] sm:$0xff] %v1096_v57  ;;  %v1100_v61 = vld [vmem:[%s2691_s22 + $0x1e8] sm:$0xff]  ;;  %v1101_v62 = vld [vmem:[%s2691_s22 + $0x1f0] sm:$0xff] }
 0x153   : > { %1225 = vst [vmem:[%s1922_s20 + $0x758] sm:$0xff] %v1097_v58  ;;  %1226 = vst [vmem:[%s1922_s20 + $0x778] sm:$0xff] %v1098_v59  ;;  %v1102_v63 = vld [vmem:[%s2691_s22 + $0x1f8] sm:$0xff]  ;;  %v1103_v0 = vld [vmem:[%s2691_s22 + $0x200] sm:$0xff] }
 0x154   : > { %1227 = vst [vmem:[%s1922_s20 + $0x798] sm:$0xff] %v1099_v60  ;;  %1228 = vst [vmem:[%s1922_s20 + $0x7b8] sm:$0xff] %v1100_v61  ;;  %v1104_v1 = vld [vmem:[%s2691_s22 + $0x208] sm:$0xff]  ;;  %v1105_v2 = vld [vmem:[%s2691_s22 + $0x210] sm:$0xff] }
 0x155   : > { %1229 = vst [vmem:[%s1922_s20 + $0x7d8] sm:$0xff] %v1101_v62  ;;  %1230 = vst [vmem:[%s1922_s20 + $0x7f8] sm:$0xff] %v1102_v63  ;;  %v1106_v3 = vld [vmem:[%s2691_s22 + $0x218] sm:$0xff]  ;;  %v1107_v4 = vld [vmem:[%s2691_s22 + $0x220] sm:$0xff] }
 0x156   : > { %1231 = vst [vmem:[%s1922_s20 + $0x818] sm:$0xff] %v1103_v0  ;;  %1232 = vst [vmem:[%s1922_s20 + $0x838] sm:$0xff] %v1104_v1  ;;  %v1108_v5 = vld [vmem:[%s2691_s22 + $0x228] sm:$0xff]  ;;  %v1109_v6 = vld [vmem:[%s2691_s22 + $0x230] sm:$0xff] }
 0x157   : > { %1233 = vst [vmem:[%s1922_s20 + $0x858] sm:$0xff] %v1105_v2  ;;  %1234 = vst [vmem:[%s1922_s20 + $0x878] sm:$0xff] %v1106_v3  ;;  %v1110_v7 = vld [vmem:[%s2691_s22 + $0x238] sm:$0xff]  ;;  %v1111_v8 = vld [vmem:[%s2691_s22 + $0x240] sm:$0xff] }
 0x158   : > { %1235 = vst [vmem:[%s1922_s20 + $0x898] sm:$0xff] %v1107_v4  ;;  %1236 = vst [vmem:[%s1922_s20 + $0x8b8] sm:$0xff] %v1108_v5  ;;  %v1112_v9 = vld [vmem:[%s2691_s22 + $0x248] sm:$0xff]  ;;  %v1113_v10 = vld [vmem:[%s2691_s22 + $0x250] sm:$0xff] }
 0x159   : > { %1237 = vst [vmem:[%s1922_s20 + $0x8d8] sm:$0xff] %v1109_v6  ;;  %1238 = vst [vmem:[%s1922_s20 + $0x8f8] sm:$0xff] %v1110_v7  ;;  %v1114_v11 = vld [vmem:[%s2691_s22 + $0x258] sm:$0xff]  ;;  %v1115_v12 = vld [vmem:[%s2691_s22 + $0x260] sm:$0xff] }
 0x15a   : > { %1239 = vst [vmem:[%s1922_s20 + $0x918] sm:$0xff] %v1111_v8  ;;  %1240 = vst [vmem:[%s1922_s20 + $0x938] sm:$0xff] %v1112_v9  ;;  %v1116_v13 = vld [vmem:[%s2691_s22 + $0x268] sm:$0xff]  ;;  %v1117_v14 = vld [vmem:[%s2691_s22 + $0x270] sm:$0xff] }
 0x15b   : > { %1241 = vst [vmem:[%s1922_s20 + $0x958] sm:$0xff] %v1113_v10  ;;  %1242 = vst [vmem:[%s1922_s20 + $0x978] sm:$0xff] %v1114_v11  ;;  %v1118_v15 = vld [vmem:[%s2691_s22 + $0x278] sm:$0xff]  ;;  %v1119_v16 = vld [vmem:[%s2691_s22 + $0x280] sm:$0xff] }
 0x15c   : > { %1243 = vst [vmem:[%s1922_s20 + $0x998] sm:$0xff] %v1115_v12  ;;  %1244 = vst [vmem:[%s1922_s20 + $0x9b8] sm:$0xff] %v1116_v13  ;;  %v1120_v17 = vld [vmem:[%s2691_s22 + $0x288] sm:$0xff]  ;;  %v1121_v18 = vld [vmem:[%s2691_s22 + $0x290] sm:$0xff] }
 0x15d   : > { %1245 = vst [vmem:[%s1922_s20 + $0x9d8] sm:$0xff] %v1117_v14  ;;  %1246 = vst [vmem:[%s1922_s20 + $0x9f8] sm:$0xff] %v1118_v15  ;;  %v1122_v19 = vld [vmem:[%s2691_s22 + $0x298] sm:$0xff]  ;;  %v1123_v20 = vld [vmem:[%s2691_s22 + $0x2a0] sm:$0xff] }
 0x15e   : > { %1247 = vst [vmem:[%s1922_s20 + $0xa18] sm:$0xff] %v1119_v16  ;;  %1248 = vst [vmem:[%s1922_s20 + $0xa38] sm:$0xff] %v1120_v17  ;;  %v1124_v21 = vld [vmem:[%s2691_s22 + $0x2a8] sm:$0xff]  ;;  %v1125_v22 = vld [vmem:[%s2691_s22 + $0x2b0] sm:$0xff] }
 0x15f   : > { %1249 = vst [vmem:[%s1922_s20 + $0xa58] sm:$0xff] %v1121_v18  ;;  %1250 = vst [vmem:[%s1922_s20 + $0xa78] sm:$0xff] %v1122_v19  ;;  %v1126_v23 = vld [vmem:[%s2691_s22 + $0x2b8] sm:$0xff]  ;;  %v1127_v24 = vld [vmem:[%s2691_s22 + $0x2c0] sm:$0xff] }
 0x160   : > { %1251 = vst [vmem:[%s1922_s20 + $0xa98] sm:$0xff] %v1123_v20  ;;  %1252 = vst [vmem:[%s1922_s20 + $0xab8] sm:$0xff] %v1124_v21  ;;  %v1128_v25 = vld [vmem:[%s2691_s22 + $0x2c8] sm:$0xff]  ;;  %v1129_v26 = vld [vmem:[%s2691_s22 + $0x2d0] sm:$0xff] }
 0x161   : > { %1253 = vst [vmem:[%s1922_s20 + $0xad8] sm:$0xff] %v1125_v22  ;;  %1254 = vst [vmem:[%s1922_s20 + $0xaf8] sm:$0xff] %v1126_v23  ;;  %v1130_v27 = vld [vmem:[%s2691_s22 + $0x2d8] sm:$0xff]  ;;  %v1131_v28 = vld [vmem:[%s2691_s22 + $0x2e0] sm:$0xff] }
 0x162   : > { %1255 = vst [vmem:[%s1922_s20 + $0xb18] sm:$0xff] %v1127_v24  ;;  %1256 = vst [vmem:[%s1922_s20 + $0xb38] sm:$0xff] %v1128_v25  ;;  %v1132_v29 = vld [vmem:[%s2691_s22 + $0x2e8] sm:$0xff]  ;;  %v1133_v30 = vld [vmem:[%s2691_s22 + $0x2f0] sm:$0xff] }
 0x163   : > { %1257 = vst [vmem:[%s1922_s20 + $0xb58] sm:$0xff] %v1129_v26  ;;  %1258 = vst [vmem:[%s1922_s20 + $0xb78] sm:$0xff] %v1130_v27  ;;  %v1134_v31 = vld [vmem:[%s2691_s22 + $0x2f8] sm:$0xff]  ;;  %v1135_v32 = vld [vmem:[%s2691_s22 + $0x300] sm:$0xff] }
 0x164   : > { %1259 = vst [vmem:[%s1922_s20 + $0xb98] sm:$0xff] %v1131_v28  ;;  %1260 = vst [vmem:[%s1922_s20 + $0xbb8] sm:$0xff] %v1132_v29  ;;  %v1136_v33 = vld [vmem:[%s2691_s22 + $0x308] sm:$0xff]  ;;  %v1137_v34 = vld [vmem:[%s2691_s22 + $0x310] sm:$0xff] }
 0x165   : > { %1261 = vst [vmem:[%s1922_s20 + $0xbd8] sm:$0xff] %v1133_v30  ;;  %1262 = vst [vmem:[%s1922_s20 + $0xbf8] sm:$0xff] %v1134_v31  ;;  %v1138_v35 = vld [vmem:[%s2691_s22 + $0x318] sm:$0xff]  ;;  %v1139_v36 = vld [vmem:[%s2691_s22 + $0x320] sm:$0xff] }
 0x166   : > { %1263 = vst [vmem:[%s1922_s20 + $0xc18] sm:$0xff] %v1135_v32  ;;  %1264 = vst [vmem:[%s1922_s20 + $0xc38] sm:$0xff] %v1136_v33  ;;  %v1140_v37 = vld [vmem:[%s2691_s22 + $0x328] sm:$0xff]  ;;  %v1141_v38 = vld [vmem:[%s2691_s22 + $0x330] sm:$0xff] }
 0x167   : > { %1265 = vst [vmem:[%s1922_s20 + $0xc58] sm:$0xff] %v1137_v34  ;;  %1266 = vst [vmem:[%s1922_s20 + $0xc78] sm:$0xff] %v1138_v35  ;;  %v1142_v39 = vld [vmem:[%s2691_s22 + $0x338] sm:$0xff]  ;;  %v1143_v40 = vld [vmem:[%s2691_s22 + $0x340] sm:$0xff] }
 0x168   : > { %1267 = vst [vmem:[%s1922_s20 + $0xc98] sm:$0xff] %v1139_v36  ;;  %1268 = vst [vmem:[%s1922_s20 + $0xcb8] sm:$0xff] %v1140_v37  ;;  %v1144_v41 = vld [vmem:[%s2691_s22 + $0x348] sm:$0xff]  ;;  %v1145_v42 = vld [vmem:[%s2691_s22 + $0x350] sm:$0xff] }
 0x169   : > { %1269 = vst [vmem:[%s1922_s20 + $0xcd8] sm:$0xff] %v1141_v38  ;;  %1270 = vst [vmem:[%s1922_s20 + $0xcf8] sm:$0xff] %v1142_v39  ;;  %v1146_v43 = vld [vmem:[%s2691_s22 + $0x358] sm:$0xff]  ;;  %v1147_v44 = vld [vmem:[%s2691_s22 + $0x360] sm:$0xff] }
 0x16a   : > { %1271 = vst [vmem:[%s1922_s20 + $0xd18] sm:$0xff] %v1143_v40  ;;  %1272 = vst [vmem:[%s1922_s20 + $0xd38] sm:$0xff] %v1144_v41  ;;  %v1148_v45 = vld [vmem:[%s2691_s22 + $0x368] sm:$0xff]  ;;  %v1149_v46 = vld [vmem:[%s2691_s22 + $0x370] sm:$0xff] }
 0x16b   : > { %1273 = vst [vmem:[%s1922_s20 + $0xd58] sm:$0xff] %v1145_v42  ;;  %1274 = vst [vmem:[%s1922_s20 + $0xd78] sm:$0xff] %v1146_v43  ;;  %v1150_v47 = vld [vmem:[%s2691_s22 + $0x378] sm:$0xff]  ;;  %v1151_v48 = vld [vmem:[%s2691_s22 + $0x380] sm:$0xff] }
 0x16c   : > { %1275 = vst [vmem:[%s1922_s20 + $0xd98] sm:$0xff] %v1147_v44  ;;  %1276 = vst [vmem:[%s1922_s20 + $0xdb8] sm:$0xff] %v1148_v45  ;;  %v1152_v49 = vld [vmem:[%s2691_s22 + $0x388] sm:$0xff]  ;;  %v1153_v50 = vld [vmem:[%s2691_s22 + $0x390] sm:$0xff] }
 0x16d   : > { %1277 = vst [vmem:[%s1922_s20 + $0xdd8] sm:$0xff] %v1149_v46  ;;  %1278 = vst [vmem:[%s1922_s20 + $0xdf8] sm:$0xff] %v1150_v47  ;;  %v1154_v51 = vld [vmem:[%s2691_s22 + $0x398] sm:$0xff]  ;;  %v1155_v52 = vld [vmem:[%s2691_s22 + $0x3a0] sm:$0xff] }
 0x16e   : > { %1279 = vst [vmem:[%s1922_s20 + $0xe18] sm:$0xff] %v1151_v48  ;;  %1280 = vst [vmem:[%s1922_s20 + $0xe38] sm:$0xff] %v1152_v49  ;;  %v1156_v53 = vld [vmem:[%s2691_s22 + $0x3a8] sm:$0xff]  ;;  %v1157_v54 = vld [vmem:[%s2691_s22 + $0x3b0] sm:$0xff] }
 0x16f   : > { %1281 = vst [vmem:[%s1922_s20 + $0xe58] sm:$0xff] %v1153_v50  ;;  %1282 = vst [vmem:[%s1922_s20 + $0xe78] sm:$0xff] %v1154_v51  ;;  %v1158_v55 = vld [vmem:[%s2691_s22 + $0x3b8] sm:$0xff]  ;;  %v1159_v56 = vld [vmem:[%s2691_s22 + $0x3c0] sm:$0xff] }
 0x170   : > { %1283 = vst [vmem:[%s1922_s20 + $0xe98] sm:$0xff] %v1155_v52  ;;  %1284 = vst [vmem:[%s1922_s20 + $0xeb8] sm:$0xff] %v1156_v53  ;;  %v1160_v57 = vld [vmem:[%s2691_s22 + $0x3c8] sm:$0xff]  ;;  %v1161_v58 = vld [vmem:[%s2691_s22 + $0x3d0] sm:$0xff] }
 0x171   : > { %1285 = vst [vmem:[%s1922_s20 + $0xed8] sm:$0xff] %v1157_v54  ;;  %1286 = vst [vmem:[%s1922_s20 + $0xef8] sm:$0xff] %v1158_v55  ;;  %v1162_v59 = vld [vmem:[%s2691_s22 + $0x3d8] sm:$0xff]  ;;  %v1163_v60 = vld [vmem:[%s2691_s22 + $0x3e0] sm:$0xff] }
 0x172   : > { %1287 = vst [vmem:[%s1922_s20 + $0xf18] sm:$0xff] %v1159_v56  ;;  %1288 = vst [vmem:[%s1922_s20 + $0xf38] sm:$0xff] %v1160_v57  ;;  %v1164_v61 = vld [vmem:[%s2691_s22 + $0x3e8] sm:$0xff]  ;;  %v1165_v62 = vld [vmem:[%s2691_s22 + $0x3f0] sm:$0xff] }
 0x173   : > { %1289 = vst [vmem:[%s1922_s20 + $0xf58] sm:$0xff] %v1161_v58  ;;  %1290 = vst [vmem:[%s1922_s20 + $0xf78] sm:$0xff] %v1162_v59  ;;  %v1166_v63 = vld [vmem:[%s2691_s22 + $0x3f8] sm:$0xff] }
 0x174   : > { %1291 = vst [vmem:[%s1922_s20 + $0xf98] sm:$0xff] %v1163_v60  ;;  %1292 = vst [vmem:[%s1922_s20 + $0xfb8] sm:$0xff] %v1164_v61 }
 0x175   : > { %1293 = vst [vmem:[%s1922_s20 + $0xfd8] sm:$0xff] %v1165_v62  ;;  %1294 = vst [vmem:[%s1922_s20 + $0xff8] sm:$0xff] %v1166_v63 }
 0x176   : > { %1621 = shalt.err (!%p1618_p10)
}
 0x177   : > { %s1622_s27 = scalar_lea.hbm %s2941_s28, 65536  ;;  %s1626_s19 = scalar_lea.hbm %s3003_s3, 131072 }
 0x178   : > { %p1623_p11 = scmp.ne.s32.totalorder %s2941_s28, %s1622_s27  ;;  %p1627_p5 = scmp.lt.u32.totalorder %s2941_s28, %s3003_s3 }
 0x179   : > { %p1628_p2 = scmp.lt.u32.totalorder %s1626_s19, %s1622_s27  ;;  %p1630_p13 = scmp.lt.u32.totalorder %s1622_s27, %s2941_s28 }
 0x17a   : > { %p1624_p4 = pnand %p1623_p11, %p3017_p7 }
 0x17b   : > { %p1629_p1 = por %p1628_p2, %p1627_p5 }
 0x17c   : > { %p1625_p3 = pneg %p1624_p4 }
 0x17d   : > { %p1631_p9 = por %p1630_p13, %p1629_p1 }
 0x17f   : > { %p1632_p6 = pnand %p1631_p9, %p1625_p3 }
 0x181   : > { %1635 = shalt.err (!%p1632_p6)
}
 0x182   : > { %s1688_s4 = smov 512   ;;  %s1689_s20 = smov 32  }
 0x183   : > { %1462 = dma.vmem_to_hbm [thread:$0]  (%p3017_p7), %s2943_s29, 65536, %s2941_s28, %s1296_s25, %s1688_s4, %s1688_s4, %s1689_s20  }
 0x184 PF: > { %s1325_s22 = sand.u32 1, %s1666_s12   ;;  %p3018_p12 = scmp.ne.s32.totalorder %s3009_s24, 0 }
 0x185   : > { %p3019_p0 = scmp.ge.s32.totalorder %s1678_s15, 2  ;;  %s1326_s7 = scalar_lea.sflag [#allocation4], %s1325_s22 }
 0x187   : > { %p1475_p8 = pnand %p3019_p0, %p3018_p12 }
 0x189   : > { %1661 = dma.done.wait (!%p1475_p8), %s1326_s7, 65536  }
 0x18a   : > { %1663 = vsyncadd (!%p1475_p8), %s1326_s7, 4294901760  ;;  %p19_p10 = scmp.ge.s32.totalorder %s1735_s18, 4   ;;  %s3020_s12 = smov %s1670_s13 }
 0x18b   : > { %s3021_s13 = smov %s1674_s14  ;;  %s3022_s14 = smov %s1747_s21 }
 0x18c   : > { %s3023_s15 = smov %s1735_s18  ;;  %21 = sbr.rel (!%p19_p10) target bundleno = 9 (0x9), region = 101 }
 0x193   :  { %1331 = vsyncpa [#allocation3], 1 }
 0x194   :  { %1333 = vsyncpa [#allocation3 + $0x1], 1 }
 0x195   :  { %1334 = vsyncpa [#allocation6], 1 }
 0x196   :  { %1336 = vsyncpa [#allocation6 + $0x1], 1 }
 0x197   :  { %1337 = vsyncpa [#allocation4], 1 }
 0x198   :  { %1339 = vsyncpa [#allocation4 + $0x1], 1 }

</bundles_post_ra>
